<compile_context>
chip_gen: v6e
topology: v6e:2x2x1
jax: 0.10.0
libtpu: 0.0.40
codegen_flags: <defaults>
</compile_context>

<pallas_src>
from functools import partial

import jax
import jax.numpy as jnp
from jax.experimental import pallas as pl
from jax.experimental.pallas import tpu as pltpu


HP = 128        # hidden (32) zero-padded so each GRU gate owns one 128-lane block
OUT_PAD = 128   # classifier output padded to a lane-dense 128-wide store


# ---------------------------------------------------------------------------
# Fused kernel: K-chunked backbone -> hoisted input projection -> GRU -> classifier
# ---------------------------------------------------------------------------
def ltsm_kernel(x_ref, netw_ref, netb_ref,
                wi_ref, bi_ref, wh_ref, bh_ref,
                w1_ref, b1_ref, w2_ref, b2_ref,
                out_ref, acc_ref, *, batch, seq):
    k = pl.program_id(0)
    nk = pl.num_programs(0)

    # ---- Phase 1 (every grid step): backbone matmul chunk, f32 VMEM accumulator.
    # net_w K-tiles are pipelined by BlockSpec, overlapping weight DMA with MXU work.
    @pl.when(k == 0)
    def _():
        acc_ref[...] = jnp.zeros_like(acc_ref)

    acc_ref[...] += jnp.dot(x_ref[...], netw_ref[...],
                            preferred_element_type=jnp.float32)

    # ---- Phases 2-4 only on the last K chunk -------------------------------
    @pl.when(k == nk - 1)
    def _():
        # Backbone bias + ReLU.  Rows are time-major (t*B + b).
        feats = jnp.maximum(acc_ref[...] + netb_ref[...], 0.0)          # (T*B, E) f32

        # Hoisted GRU input projections, kept 2-D; gates lane-aligned at 0/128/256.
        ig = jnp.dot(feats.astype(jnp.bfloat16), wi_ref[...],
                     preferred_element_type=jnp.float32) + bi_ref[...]  # (T*B, 3*HP)

        wh = wh_ref[...]                          # (HP, 3*HP) bf16, resident
        bh = bh_ref[...]                          # (1, 3*HP)  f32
        h = jnp.zeros((batch, HP), jnp.float32)   # h_0 = 0 (PyTorch default), padded lanes stay 0
        # TODO(synk): for large T switch to lax.fori_loop carrying h to bound vreg pressure.
        for t in range(seq):
            ig_t = ig[t * batch:(t + 1) * batch, :]        # contiguous time-major rows
            hg = jnp.dot(h.astype(jnp.bfloat16), wh,
                         preferred_element_type=jnp.float32) + bh
            i_r, i_z, i_n = ig_t[:, :HP], ig_t[:, HP:2 * HP], ig_t[:, 2 * HP:]
            h_r, h_z, h_n = hg[:, :HP], hg[:, HP:2 * HP], hg[:, 2 * HP:]
            r = jax.nn.sigmoid(i_r + h_r)
            z = jax.nn.sigmoid(i_z + h_z)
            n = jnp.tanh(i_n + r * h_n)            # n = tanh(i_n + r*(W_hn h + b_hn))
            h = (1.0 - z) * n + z * h

        # Classifier epilogue.  Dropout(p=0.5) is eval-mode identity.
        # TODO(synk): training-mode dropout would need pltpu.prng_seed/prng_random_bits.
        mid = jnp.dot(h.astype(jnp.bfloat16), w1_ref[...],
                      preferred_element_type=jnp.float32) + b1_ref[...]
        out_ref[...] = jnp.dot(mid.astype(jnp.bfloat16), w2_ref[...],
                               preferred_element_type=jnp.float32) + b2_ref[...]


def fused_ltsm(x_flat, p, *, batch, seq, tk=256):
    n, d = x_flat.shape                 # n = T*B (time-major rows)
    e = p["net_w"].shape[1]
    g3 = p["w_i"].shape[1]              # 3 * HP
    m = p["cls_w1"].shape[1]            # 200
    tk = min(tk, d)
    assert d % tk == 0, "D_IN must be divisible by the K tile"
    kt = d // tk

    const = lambda shape: pl.BlockSpec(shape, lambda k: (0,) * len(shape))
    kernel = partial(ltsm_kernel, batch=batch, seq=seq)

    return pl.pallas_call(
        kernel,
        out_shape=jax.ShapeDtypeStruct((batch, OUT_PAD), jnp.float32),
        grid=(kt,),
        in_specs=[
            pl.BlockSpec((n, tk), lambda k: (0, k)),   # x_flat, K-chunked (bf16)
            pl.BlockSpec((tk, e), lambda k: (k, 0)),   # net_w, K-chunked (DMA/MXU overlap)
            const((1, e)),       # net_b
            const((e, g3)),      # fused GRU input weights  [W_ir|W_iz|W_in], gate-padded
            const((1, g3)),      # fused input bias
            const((HP, g3)),     # fused GRU hidden weights [W_hr|W_hz|W_hn], row+gate padded
            const((1, g3)),      # fused hidden bias
            const((HP, m)),      # classifier W1 (row padded)
            const((1, m)),       # classifier b1
            const((m, OUT_PAD)), # classifier W2 (lane-dense padded output)
            const((1, OUT_PAD)), # classifier b2
        ],
        out_specs=const((batch, OUT_PAD)),
        scratch_shapes=[pltpu.VMEM((n, e), jnp.float32)],   # feats accumulator
        compiler_params=pltpu.CompilerParams(
            dimension_semantics=("arbitrary",),   # single K reduction axis
            vmem_limit_bytes=32 << 20,            # explicit headroom (safe on v5e/v6e/v7x)
        ),
    )(x_flat, p["net_w"], p["net_b"],
      p["w_i"], p["b_i"], p["w_h"], p["b_h"],
      p["cls_w1"], p["cls_b1"], p["cls_w2"], p["cls_b2"])


# ---------------------------------------------------------------------------
# Full forward (only reshape/transpose glue in plain JAX)
# ---------------------------------------------------------------------------
def ltsm_forward(x, params):
    b, t, c, hh, ww = x.shape
    # net: Flatten (NCHW row-major).  Reorder rows to time-major (t*B + b) so each
    # GRU step reads a contiguous 2-D row slice of the hoisted projection; cast to
    # bf16 in the same fused layout pass to halve the x HBM->VMEM DMA bytes.
    x_tm = jnp.transpose(x.reshape(b, t, c * hh * ww), (1, 0, 2))
    x_tm = x_tm.reshape(t * b, c * hh * ww).astype(jnp.bfloat16)
    out_padded = fused_ltsm(x_tm, params, batch=b, seq=t)   # (B, OUT_PAD)
    return out_padded[:, :4]                                # (B, 4)


# ---------------------------------------------------------------------------
# Parameter construction (gate-/lane-padded layouts; padding is exact zeros)
# ---------------------------------------------------------------------------
def init_params(key, d_in, embedding, hidden):
    ks = jax.random.split(key, 10)

    def u(k, shape, scale):
        return jax.random.uniform(k, shape, jnp.float32, -scale, scale)

    def pad_gate_cols(w, src_h):
        # (rows, 3*src_h) -> (rows, 3*HP): each gate zero-padded to its own 128-lane block.
        out = jnp.zeros((w.shape[0], 3 * HP), w.dtype)
        for g in range(3):
            out = out.at[:, g * HP:g * HP + src_h].set(w[:, g * src_h:(g + 1) * src_h])
        return out

    def pad_rows(w, rows):
        out = jnp.zeros((rows, w.shape[1]), w.dtype)
        return out.at[:w.shape[0], :].set(w)

    s_net = 1.0 / jnp.sqrt(jnp.float32(d_in))
    s_gru = 1.0 / jnp.sqrt(jnp.float32(hidden))
    s_c2 = 1.0 / jnp.sqrt(jnp.float32(200.0))
    g3 = 3 * hidden

    w_i = u(ks[2], (embedding, g3), s_gru)     # PyTorch gate order (r, z, n), (in, out) layout
    w_h = u(ks[3], (hidden, g3), s_gru)
    b_i = u(ks[4], (1, g3), s_gru)
    b_h = u(ks[5], (1, g3), s_gru)
    cls_w1 = u(ks[6], (hidden, 200), s_gru)
    cls_w2 = u(ks[8], (200, 4), s_c2)
    cls_b2 = u(ks[9], (1, 4), s_c2)

    return {
        # backbone: Flatten + Linear(d_in, 512) + ReLU  ((in, out) layout, bf16)
        "net_w": u(ks[0], (d_in, embedding), s_net).astype(jnp.bfloat16),
        "net_b": u(ks[1], (1, embedding), s_net),
        # fused GRU weights, each gate padded to a 128-lane block (bf16 weights, f32 biases)
        "w_i": pad_gate_cols(w_i, hidden).astype(jnp.bfloat16),
        "w_h": pad_rows(pad_gate_cols(w_h, hidden), HP).astype(jnp.bfloat16),
        "b_i": pad_gate_cols(b_i, hidden),
        "b_h": pad_gate_cols(b_h, hidden),
        # classifier (hidden rows / output cols zero-padded for lane-dense layout)
        "cls_w1": pad_rows(cls_w1, HP).astype(jnp.bfloat16),
        "cls_b1": u(ks[7], (1, 200), s_gru),
        "cls_w2": jnp.zeros((200, OUT_PAD), jnp.float32).at[:, :4].set(cls_w2).astype(jnp.bfloat16),
        "cls_b2": jnp.zeros((1, OUT_PAD), jnp.float32).at[:, :4].set(cls_b2),
    }


if __name__ == "__main__":
    B, T, C, H, W = 2, 8, 4, 16, 16       # input (B, T, C, H, W)
    EMBEDDING, HIDDEN = 512, 32           # embedding must be 512 (forward's view contract)
    D_IN = C * H * W

    key = jax.random.PRNGKey(0)
    kx, kp = jax.random.split(key)
    x = jax.random.normal(kx, (B, T, C, H, W), jnp.float32)
    params = init_params(kp, D_IN, EMBEDDING, HIDDEN)

    out = jax.jit(ltsm_forward)(x, params)
    out = jax.block_until_ready(out)
    assert out.shape == (B, 4) and out.dtype == jnp.float32
    print("KERNEL_OK")
</pallas_src>

<mosaic_0001>
module attributes {stable_mosaic.version = 11 : i64} {
  func.func @ltsm_kernel(%arg0: i32, %arg1: memref<16x256xbf16, #tpu.memory_space<vmem>>, %arg2: memref<256x512xbf16, #tpu.memory_space<vmem>>, %arg3: memref<1x512xf32, #tpu.memory_space<vmem>>, %arg4: memref<512x384xbf16, #tpu.memory_space<vmem>>, %arg5: memref<1x384xf32, #tpu.memory_space<vmem>>, %arg6: memref<128x384xbf16, #tpu.memory_space<vmem>>, %arg7: memref<1x384xf32, #tpu.memory_space<vmem>>, %arg8: memref<128x200xbf16, #tpu.memory_space<vmem>>, %arg9: memref<1x200xf32, #tpu.memory_space<vmem>>, %arg10: memref<200x128xbf16, #tpu.memory_space<vmem>>, %arg11: memref<1x128xf32, #tpu.memory_space<vmem>>, %arg12: memref<2x128xf32, #tpu.memory_space<vmem>>, %arg13: memref<16x512xf32, #tpu.memory_space<vmem>>) attributes {dimension_semantics = [#tpu.dimension_semantics<arbitrary>], iteration_bounds = array<i64: 4>, scalar_prefetch = 0 : i64, scratch_operands = 1 : i64, tpu.core_type = #tpu.core_type<tc>, window_params = [{transform_indices = @transform_0, window_bounds = array<i64: 16, 256>}, {transform_indices = @transform_1, window_bounds = array<i64: 256, 512>}, {pipeline_mode = #tpu.pipeline_mode<synchronous>, transform_indices = @transform_2, window_bounds = array<i64: 1, 512>}, {pipeline_mode = #tpu.pipeline_mode<synchronous>, transform_indices = @transform_3, window_bounds = array<i64: 512, 384>}, {pipeline_mode = #tpu.pipeline_mode<synchronous>, transform_indices = @transform_4, window_bounds = array<i64: 1, 384>}, {pipeline_mode = #tpu.pipeline_mode<synchronous>, transform_indices = @transform_5, window_bounds = array<i64: 128, 384>}, {pipeline_mode = #tpu.pipeline_mode<synchronous>, transform_indices = @transform_6, window_bounds = array<i64: 1, 384>}, {pipeline_mode = #tpu.pipeline_mode<synchronous>, transform_indices = @transform_7, window_bounds = array<i64: 128, 200>}, {pipeline_mode = #tpu.pipeline_mode<synchronous>, transform_indices = @transform_8, window_bounds = array<i64: 1, 200>}, {pipeline_mode = #tpu.pipeline_mode<synchronous>, transform_indices = @transform_9, window_bounds = array<i64: 200, 128>}, {pipeline_mode = #tpu.pipeline_mode<synchronous>, transform_indices = @transform_10, window_bounds = array<i64: 1, 128>}, {pipeline_mode = #tpu.pipeline_mode<synchronous>, transform_indices = @transform_11, window_bounds = array<i64: 2, 128>}]} {
    %c0_i32 = arith.constant 0 : i32
    %0 = arith.cmpi eq, %arg0, %c0_i32 : i32
    %1 = arith.extui %0 : i1 to i32
    %c0_i32_0 = arith.constant 0 : i32
    %2 = arith.cmpi ne, %1, %c0_i32_0 : i32
    scf.if %2 {
      %cst_9 = arith.constant 0.000000e+00 : f32
      %12 = vector.broadcast %cst_9 : f32 to vector<16x512xf32>
      %c0_10 = arith.constant 0 : index
      %c0_11 = arith.constant 0 : index
      %13 = vector.load %arg13[%c0_10, %c0_11] : memref<16x512xf32, #tpu.memory_space<vmem>>, vector<16x512xf32>
      tpu.vector_store %arg13[%c0_10, %c0_11], %12 {strides = array<i32>} : memref<16x512xf32, #tpu.memory_space<vmem>>, vector<16x512xf32>,
    } else {
    }
    %c0 = arith.constant 0 : index
    %c0_1 = arith.constant 0 : index
    %3 = vector.load %arg13[%c0, %c0_1] : memref<16x512xf32, #tpu.memory_space<vmem>>, vector<16x512xf32>
    %c0_2 = arith.constant 0 : index
    %c0_3 = arith.constant 0 : index
    %4 = vector.load %arg1[%c0_2, %c0_3] : memref<16x256xbf16, #tpu.memory_space<vmem>>, vector<16x256xbf16>
    %c0_4 = arith.constant 0 : index
    %c0_5 = arith.constant 0 : index
    %5 = vector.load %arg2[%c0_4, %c0_5] : memref<256x512xbf16, #tpu.memory_space<vmem>>, vector<256x512xbf16>
    %cst = arith.constant dense<0.000000e+00> : vector<16x512xf32>
    %6 = tpu.matmul %4, %5, %cst {dimension_numbers = #tpu.dot_dimension_numbers<[1], [0], [0], [1], [0, 0, 1, 1], [], []>} : vector<16x256xbf16>, vector<256x512xbf16>, vector<16x512xf32> -> vector<16x512xf32>
    %7 = arith.addf %3, %6 : vector<16x512xf32>
    %c0_6 = arith.constant 0 : index
    %c0_7 = arith.constant 0 : index
    %8 = vector.load %arg13[%c0_6, %c0_7] : memref<16x512xf32, #tpu.memory_space<vmem>>, vector<16x512xf32>
    tpu.vector_store %arg13[%c0_6, %c0_7], %7 {strides = array<i32>} : memref<16x512xf32, #tpu.memory_space<vmem>>, vector<16x512xf32>,
    %c3_i32 = arith.constant 3 : i32
    %9 = arith.cmpi eq, %arg0, %c3_i32 : i32
    %10 = arith.extui %9 : i1 to i32
    %c0_i32_8 = arith.constant 0 : i32
    %11 = arith.cmpi ne, %10, %c0_i32_8 : i32
    scf.if %11 {
      %c0_9 = arith.constant 0 : index
      %c0_10 = arith.constant 0 : index
      %12 = vector.load %arg13[%c0_9, %c0_10] : memref<16x512xf32, #tpu.memory_space<vmem>>, vector<16x512xf32>
      %c0_11 = arith.constant 0 : index
      %c0_12 = arith.constant 0 : index
      %13 = vector.load %arg3[%c0_11, %c0_12] : memref<1x512xf32, #tpu.memory_space<vmem>>, vector<1x512xf32>
      %14 = vector.broadcast %13 : vector<1x512xf32> to vector<16x512xf32>
      %15 = arith.addf %12, %14 : vector<16x512xf32>
      %cst_13 = arith.constant 0.000000e+00 : f32
      %16 = vector.broadcast %cst_13 : f32 to vector<16x512xf32>
      %17 = arith.maximumf %15, %16 : vector<16x512xf32>
      %18 = arith.truncf %17 : vector<16x512xf32> to vector<16x512xbf16>
      %c0_14 = arith.constant 0 : index
      %c0_15 = arith.constant 0 : index
      %19 = vector.load %arg4[%c0_14, %c0_15] : memref<512x384xbf16, #tpu.memory_space<vmem>>, vector<512x384xbf16>
      %cst_16 = arith.constant dense<0.000000e+00> : vector<16x384xf32>
      %20 = tpu.matmul %18, %19, %cst_16 {dimension_numbers = #tpu.dot_dimension_numbers<[1], [0], [0], [1], [0, 0, 1, 1], [], []>} : vector<16x512xbf16>, vector<512x384xbf16>, vector<16x384xf32> -> vector<16x384xf32>
      %c0_17 = arith.constant 0 : index
      %c0_18 = arith.constant 0 : index
      %21 = vector.load %arg5[%c0_17, %c0_18] : memref<1x384xf32, #tpu.memory_space<vmem>>, vector<1x384xf32>
      %22 = vector.broadcast %21 : vector<1x384xf32> to vector<16x384xf32>
      %23 = arith.addf %20, %22 : vector<16x384xf32>
      %c0_19 = arith.constant 0 : index
      %c0_20 = arith.constant 0 : index
      %24 = vector.load %arg6[%c0_19, %c0_20] : memref<128x384xbf16, #tpu.memory_space<vmem>>, vector<128x384xbf16>
      %c0_21 = arith.constant 0 : index
      %c0_22 = arith.constant 0 : index
      %25 = vector.load %arg7[%c0_21, %c0_22] : memref<1x384xf32, #tpu.memory_space<vmem>>, vector<1x384xf32>
      %cst_23 = arith.constant 0.000000e+00 : f32
      %26 = vector.broadcast %cst_23 : f32 to vector<2x128xf32>
      %27 = vector.extract_strided_slice %23 {offsets = [0, 0], sizes = [2, 384], strides = [1, 1]} : vector<16x384xf32> to vector<2x384xf32>
      %28 = arith.truncf %26 : vector<2x128xf32> to vector<2x128xbf16>
      %cst_24 = arith.constant dense<0.000000e+00> : vector<2x384xf32>
      %29 = tpu.matmul %28, %24, %cst_24 {dimension_numbers = #tpu.dot_dimension_numbers<[1], [0], [0], [1], [0, 0, 1, 1], [], []>} : vector<2x128xbf16>, vector<128x384xbf16>, vector<2x384xf32> -> vector<2x384xf32>
      %30 = vector.broadcast %25 : vector<1x384xf32> to vector<2x384xf32>
      %31 = arith.addf %29, %30 : vector<2x384xf32>
      %32 = vector.extract_strided_slice %27 {offsets = [0, 0], sizes = [2, 128], strides = [1, 1]} : vector<2x384xf32> to vector<2x128xf32>
      %33 = vector.extract_strided_slice %27 {offsets = [0, 128], sizes = [2, 128], strides = [1, 1]} : vector<2x384xf32> to vector<2x128xf32>
      %34 = vector.extract_strided_slice %27 {offsets = [0, 256], sizes = [2, 128], strides = [1, 1]} : vector<2x384xf32> to vector<2x128xf32>
      %35 = vector.extract_strided_slice %31 {offsets = [0, 0], sizes = [2, 128], strides = [1, 1]} : vector<2x384xf32> to vector<2x128xf32>
      %36 = vector.extract_strided_slice %31 {offsets = [0, 128], sizes = [2, 128], strides = [1, 1]} : vector<2x384xf32> to vector<2x128xf32>
      %37 = vector.extract_strided_slice %31 {offsets = [0, 256], sizes = [2, 128], strides = [1, 1]} : vector<2x384xf32> to vector<2x128xf32>
      %38 = arith.addf %32, %35 : vector<2x128xf32>
      %39 = arith.negf %38 : vector<2x128xf32>
      %40 = math.exp %39 : vector<2x128xf32>
      %cst_25 = arith.constant 1.000000e+00 : f32
      %41 = vector.broadcast %cst_25 : f32 to vector<2x128xf32>
      %42 = arith.addf %41, %40 : vector<2x128xf32>
      %43 = arith.divf %41, %42 : vector<2x128xf32>
      %44 = arith.addf %33, %36 : vector<2x128xf32>
      %45 = arith.negf %44 : vector<2x128xf32>
      %46 = math.exp %45 : vector<2x128xf32>
      %cst_26 = arith.constant 1.000000e+00 : f32
      %47 = vector.broadcast %cst_26 : f32 to vector<2x128xf32>
      %48 = arith.addf %47, %46 : vector<2x128xf32>
      %49 = arith.divf %47, %48 : vector<2x128xf32>
      %50 = arith.mulf %43, %37 : vector<2x128xf32>
      %51 = arith.addf %34, %50 : vector<2x128xf32>
      %52 = math.tanh %51 : vector<2x128xf32>
      %cst_27 = arith.constant 1.000000e+00 : f32
      %53 = vector.broadcast %cst_27 : f32 to vector<2x128xf32>
      %54 = arith.subf %53, %49 : vector<2x128xf32>
      %55 = arith.mulf %54, %52 : vector<2x128xf32>
      %56 = arith.mulf %49, %26 : vector<2x128xf32>
      %57 = arith.addf %55, %56 : vector<2x128xf32>
      %58 = vector.extract_strided_slice %23 {offsets = [2, 0], sizes = [2, 384], strides = [1, 1]} : vector<16x384xf32> to vector<2x384xf32>
      %59 = arith.truncf %57 : vector<2x128xf32> to vector<2x128xbf16>
      %cst_28 = arith.constant dense<0.000000e+00> : vector<2x384xf32>
      %60 = tpu.matmul %59, %24, %cst_28 {dimension_numbers = #tpu.dot_dimension_numbers<[1], [0], [0], [1], [0, 0, 1, 1], [], []>} : vector<2x128xbf16>, vector<128x384xbf16>, vector<2x384xf32> -> vector<2x384xf32>
      %61 = vector.broadcast %25 : vector<1x384xf32> to vector<2x384xf32>
      %62 = arith.addf %60, %61 : vector<2x384xf32>
      %63 = vector.extract_strided_slice %58 {offsets = [0, 0], sizes = [2, 128], strides = [1, 1]} : vector<2x384xf32> to vector<2x128xf32>
      %64 = vector.extract_strided_slice %58 {offsets = [0, 128], sizes = [2, 128], strides = [1, 1]} : vector<2x384xf32> to vector<2x128xf32>
      %65 = vector.extract_strided_slice %58 {offsets = [0, 256], sizes = [2, 128], strides = [1, 1]} : vector<2x384xf32> to vector<2x128xf32>
      %66 = vector.extract_strided_slice %62 {offsets = [0, 0], sizes = [2, 128], strides = [1, 1]} : vector<2x384xf32> to vector<2x128xf32>
      %67 = vector.extract_strided_slice %62 {offsets = [0, 128], sizes = [2, 128], strides = [1, 1]} : vector<2x384xf32> to vector<2x128xf32>
      %68 = vector.extract_strided_slice %62 {offsets = [0, 256], sizes = [2, 128], strides = [1, 1]} : vector<2x384xf32> to vector<2x128xf32>
      %69 = arith.addf %63, %66 : vector<2x128xf32>
      %70 = arith.negf %69 : vector<2x128xf32>
      %71 = math.exp %70 : vector<2x128xf32>
      %cst_29 = arith.constant 1.000000e+00 : f32
      %72 = vector.broadcast %cst_29 : f32 to vector<2x128xf32>
      %73 = arith.addf %72, %71 : vector<2x128xf32>
      %74 = arith.divf %72, %73 : vector<2x128xf32>
      %75 = arith.addf %64, %67 : vector<2x128xf32>
      %76 = arith.negf %75 : vector<2x128xf32>
      %77 = math.exp %76 : vector<2x128xf32>
      %cst_30 = arith.constant 1.000000e+00 : f32
      %78 = vector.broadcast %cst_30 : f32 to vector<2x128xf32>
      %79 = arith.addf %78, %77 : vector<2x128xf32>
      %80 = arith.divf %78, %79 : vector<2x128xf32>
      %81 = arith.mulf %74, %68 : vector<2x128xf32>
      %82 = arith.addf %65, %81 : vector<2x128xf32>
      %83 = math.tanh %82 : vector<2x128xf32>
      %cst_31 = arith.constant 1.000000e+00 : f32
      %84 = vector.broadcast %cst_31 : f32 to vector<2x128xf32>
      %85 = arith.subf %84, %80 : vector<2x128xf32>
      %86 = arith.mulf %85, %83 : vector<2x128xf32>
      %87 = arith.mulf %80, %57 : vector<2x128xf32>
      %88 = arith.addf %86, %87 : vector<2x128xf32>
      %89 = vector.extract_strided_slice %23 {offsets = [4, 0], sizes = [2, 384], strides = [1, 1]} : vector<16x384xf32> to vector<2x384xf32>
      %90 = arith.truncf %88 : vector<2x128xf32> to vector<2x128xbf16>
      %cst_32 = arith.constant dense<0.000000e+00> : vector<2x384xf32>
      %91 = tpu.matmul %90, %24, %cst_32 {dimension_numbers = #tpu.dot_dimension_numbers<[1], [0], [0], [1], [0, 0, 1, 1], [], []>} : vector<2x128xbf16>, vector<128x384xbf16>, vector<2x384xf32> -> vector<2x384xf32>
      %92 = vector.broadcast %25 : vector<1x384xf32> to vector<2x384xf32>
      %93 = arith.addf %91, %92 : vector<2x384xf32>
      %94 = vector.extract_strided_slice %89 {offsets = [0, 0], sizes = [2, 128], strides = [1, 1]} : vector<2x384xf32> to vector<2x128xf32>
      %95 = vector.extract_strided_slice %89 {offsets = [0, 128], sizes = [2, 128], strides = [1, 1]} : vector<2x384xf32> to vector<2x128xf32>
      %96 = vector.extract_strided_slice %89 {offsets = [0, 256], sizes = [2, 128], strides = [1, 1]} : vector<2x384xf32> to vector<2x128xf32>
      %97 = vector.extract_strided_slice %93 {offsets = [0, 0], sizes = [2, 128], strides = [1, 1]} : vector<2x384xf32> to vector<2x128xf32>
      %98 = vector.extract_strided_slice %93 {offsets = [0, 128], sizes = [2, 128], strides = [1, 1]} : vector<2x384xf32> to vector<2x128xf32>
      %99 = vector.extract_strided_slice %93 {offsets = [0, 256], sizes = [2, 128], strides = [1, 1]} : vector<2x384xf32> to vector<2x128xf32>
      %100 = arith.addf %94, %97 : vector<2x128xf32>
      %101 = arith.negf %100 : vector<2x128xf32>
      %102 = math.exp %101 : vector<2x128xf32>
      %cst_33 = arith.constant 1.000000e+00 : f32
      %103 = vector.broadcast %cst_33 : f32 to vector<2x128xf32>
      %104 = arith.addf %103, %102 : vector<2x128xf32>
      %105 = arith.divf %103, %104 : vector<2x128xf32>
      %106 = arith.addf %95, %98 : vector<2x128xf32>
      %107 = arith.negf %106 : vector<2x128xf32>
      %108 = math.exp %107 : vector<2x128xf32>
      %cst_34 = arith.constant 1.000000e+00 : f32
      %109 = vector.broadcast %cst_34 : f32 to vector<2x128xf32>
      %110 = arith.addf %109, %108 : vector<2x128xf32>
      %111 = arith.divf %109, %110 : vector<2x128xf32>
      %112 = arith.mulf %105, %99 : vector<2x128xf32>
      %113 = arith.addf %96, %112 : vector<2x128xf32>
      %114 = math.tanh %113 : vector<2x128xf32>
      %cst_35 = arith.constant 1.000000e+00 : f32
      %115 = vector.broadcast %cst_35 : f32 to vector<2x128xf32>
      %116 = arith.subf %115, %111 : vector<2x128xf32>
      %117 = arith.mulf %116, %114 : vector<2x128xf32>
      %118 = arith.mulf %111, %88 : vector<2x128xf32>
      %119 = arith.addf %117, %118 : vector<2x128xf32>
      %120 = vector.extract_strided_slice %23 {offsets = [6, 0], sizes = [2, 384], strides = [1, 1]} : vector<16x384xf32> to vector<2x384xf32>
      %121 = arith.truncf %119 : vector<2x128xf32> to vector<2x128xbf16>
      %cst_36 = arith.constant dense<0.000000e+00> : vector<2x384xf32>
      %122 = tpu.matmul %121, %24, %cst_36 {dimension_numbers = #tpu.dot_dimension_numbers<[1], [0], [0], [1], [0, 0, 1, 1], [], []>} : vector<2x128xbf16>, vector<128x384xbf16>, vector<2x384xf32> -> vector<2x384xf32>
      %123 = vector.broadcast %25 : vector<1x384xf32> to vector<2x384xf32>
      %124 = arith.addf %122, %123 : vector<2x384xf32>
      %125 = vector.extract_strided_slice %120 {offsets = [0, 0], sizes = [2, 128], strides = [1, 1]} : vector<2x384xf32> to vector<2x128xf32>
      %126 = vector.extract_strided_slice %120 {offsets = [0, 128], sizes = [2, 128], strides = [1, 1]} : vector<2x384xf32> to vector<2x128xf32>
      %127 = vector.extract_strided_slice %120 {offsets = [0, 256], sizes = [2, 128], strides = [1, 1]} : vector<2x384xf32> to vector<2x128xf32>
      %128 = vector.extract_strided_slice %124 {offsets = [0, 0], sizes = [2, 128], strides = [1, 1]} : vector<2x384xf32> to vector<2x128xf32>
      %129 = vector.extract_strided_slice %124 {offsets = [0, 128], sizes = [2, 128], strides = [1, 1]} : vector<2x384xf32> to vector<2x128xf32>
      %130 = vector.extract_strided_slice %124 {offsets = [0, 256], sizes = [2, 128], strides = [1, 1]} : vector<2x384xf32> to vector<2x128xf32>
      %131 = arith.addf %125, %128 : vector<2x128xf32>
      %132 = arith.negf %131 : vector<2x128xf32>
      %133 = math.exp %132 : vector<2x128xf32>
      %cst_37 = arith.constant 1.000000e+00 : f32
      %134 = vector.broadcast %cst_37 : f32 to vector<2x128xf32>
      %135 = arith.addf %134, %133 : vector<2x128xf32>
      %136 = arith.divf %134, %135 : vector<2x128xf32>
      %137 = arith.addf %126, %129 : vector<2x128xf32>
      %138 = arith.negf %137 : vector<2x128xf32>
      %139 = math.exp %138 : vector<2x128xf32>
      %cst_38 = arith.constant 1.000000e+00 : f32
      %140 = vector.broadcast %cst_38 : f32 to vector<2x128xf32>
      %141 = arith.addf %140, %139 : vector<2x128xf32>
      %142 = arith.divf %140, %141 : vector<2x128xf32>
      %143 = arith.mulf %136, %130 : vector<2x128xf32>
      %144 = arith.addf %127, %143 : vector<2x128xf32>
      %145 = math.tanh %144 : vector<2x128xf32>
      %cst_39 = arith.constant 1.000000e+00 : f32
      %146 = vector.broadcast %cst_39 : f32 to vector<2x128xf32>
      %147 = arith.subf %146, %142 : vector<2x128xf32>
      %148 = arith.mulf %147, %145 : vector<2x128xf32>
      %149 = arith.mulf %142, %119 : vector<2x128xf32>
      %150 = arith.addf %148, %149 : vector<2x128xf32>
      %151 = vector.extract_strided_slice %23 {offsets = [8, 0], sizes = [2, 384], strides = [1, 1]} : vector<16x384xf32> to vector<2x384xf32>
      %152 = arith.truncf %150 : vector<2x128xf32> to vector<2x128xbf16>
      %cst_40 = arith.constant dense<0.000000e+00> : vector<2x384xf32>
      %153 = tpu.matmul %152, %24, %cst_40 {dimension_numbers = #tpu.dot_dimension_numbers<[1], [0], [0], [1], [0, 0, 1, 1], [], []>} : vector<2x128xbf16>, vector<128x384xbf16>, vector<2x384xf32> -> vector<2x384xf32>
      %154 = vector.broadcast %25 : vector<1x384xf32> to vector<2x384xf32>
      %155 = arith.addf %153, %154 : vector<2x384xf32>
      %156 = vector.extract_strided_slice %151 {offsets = [0, 0], sizes = [2, 128], strides = [1, 1]} : vector<2x384xf32> to vector<2x128xf32>
      %157 = vector.extract_strided_slice %151 {offsets = [0, 128], sizes = [2, 128], strides = [1, 1]} : vector<2x384xf32> to vector<2x128xf32>
      %158 = vector.extract_strided_slice %151 {offsets = [0, 256], sizes = [2, 128], strides = [1, 1]} : vector<2x384xf32> to vector<2x128xf32>
      %159 = vector.extract_strided_slice %155 {offsets = [0, 0], sizes = [2, 128], strides = [1, 1]} : vector<2x384xf32> to vector<2x128xf32>
      %160 = vector.extract_strided_slice %155 {offsets = [0, 128], sizes = [2, 128], strides = [1, 1]} : vector<2x384xf32> to vector<2x128xf32>
      %161 = vector.extract_strided_slice %155 {offsets = [0, 256], sizes = [2, 128], strides = [1, 1]} : vector<2x384xf32> to vector<2x128xf32>
      %162 = arith.addf %156, %159 : vector<2x128xf32>
      %163 = arith.negf %162 : vector<2x128xf32>
      %164 = math.exp %163 : vector<2x128xf32>
      %cst_41 = arith.constant 1.000000e+00 : f32
      %165 = vector.broadcast %cst_41 : f32 to vector<2x128xf32>
      %166 = arith.addf %165, %164 : vector<2x128xf32>
      %167 = arith.divf %165, %166 : vector<2x128xf32>
      %168 = arith.addf %157, %160 : vector<2x128xf32>
      %169 = arith.negf %168 : vector<2x128xf32>
      %170 = math.exp %169 : vector<2x128xf32>
      %cst_42 = arith.constant 1.000000e+00 : f32
      %171 = vector.broadcast %cst_42 : f32 to vector<2x128xf32>
      %172 = arith.addf %171, %170 : vector<2x128xf32>
      %173 = arith.divf %171, %172 : vector<2x128xf32>
      %174 = arith.mulf %167, %161 : vector<2x128xf32>
      %175 = arith.addf %158, %174 : vector<2x128xf32>
      %176 = math.tanh %175 : vector<2x128xf32>
      %cst_43 = arith.constant 1.000000e+00 : f32
      %177 = vector.broadcast %cst_43 : f32 to vector<2x128xf32>
      %178 = arith.subf %177, %173 : vector<2x128xf32>
      %179 = arith.mulf %178, %176 : vector<2x128xf32>
      %180 = arith.mulf %173, %150 : vector<2x128xf32>
      %181 = arith.addf %179, %180 : vector<2x128xf32>
      %182 = vector.extract_strided_slice %23 {offsets = [10, 0], sizes = [2, 384], strides = [1, 1]} : vector<16x384xf32> to vector<2x384xf32>
      %183 = arith.truncf %181 : vector<2x128xf32> to vector<2x128xbf16>
      %cst_44 = arith.constant dense<0.000000e+00> : vector<2x384xf32>
      %184 = tpu.matmul %183, %24, %cst_44 {dimension_numbers = #tpu.dot_dimension_numbers<[1], [0], [0], [1], [0, 0, 1, 1], [], []>} : vector<2x128xbf16>, vector<128x384xbf16>, vector<2x384xf32> -> vector<2x384xf32>
      %185 = vector.broadcast %25 : vector<1x384xf32> to vector<2x384xf32>
      %186 = arith.addf %184, %185 : vector<2x384xf32>
      %187 = vector.extract_strided_slice %182 {offsets = [0, 0], sizes = [2, 128], strides = [1, 1]} : vector<2x384xf32> to vector<2x128xf32>
      %188 = vector.extract_strided_slice %182 {offsets = [0, 128], sizes = [2, 128], strides = [1, 1]} : vector<2x384xf32> to vector<2x128xf32>
      %189 = vector.extract_strided_slice %182 {offsets = [0, 256], sizes = [2, 128], strides = [1, 1]} : vector<2x384xf32> to vector<2x128xf32>
      %190 = vector.extract_strided_slice %186 {offsets = [0, 0], sizes = [2, 128], strides = [1, 1]} : vector<2x384xf32> to vector<2x128xf32>
      %191 = vector.extract_strided_slice %186 {offsets = [0, 128], sizes = [2, 128], strides = [1, 1]} : vector<2x384xf32> to vector<2x128xf32>
      %192 = vector.extract_strided_slice %186 {offsets = [0, 256], sizes = [2, 128], strides = [1, 1]} : vector<2x384xf32> to vector<2x128xf32>
      %193 = arith.addf %187, %190 : vector<2x128xf32>
      %194 = arith.negf %193 : vector<2x128xf32>
      %195 = math.exp %194 : vector<2x128xf32>
      %cst_45 = arith.constant 1.000000e+00 : f32
      %196 = vector.broadcast %cst_45 : f32 to vector<2x128xf32>
      %197 = arith.addf %196, %195 : vector<2x128xf32>
      %198 = arith.divf %196, %197 : vector<2x128xf32>
      %199 = arith.addf %188, %191 : vector<2x128xf32>
      %200 = arith.negf %199 : vector<2x128xf32>
      %201 = math.exp %200 : vector<2x128xf32>
      %cst_46 = arith.constant 1.000000e+00 : f32
      %202 = vector.broadcast %cst_46 : f32 to vector<2x128xf32>
      %203 = arith.addf %202, %201 : vector<2x128xf32>
      %204 = arith.divf %202, %203 : vector<2x128xf32>
      %205 = arith.mulf %198, %192 : vector<2x128xf32>
      %206 = arith.addf %189, %205 : vector<2x128xf32>
      %207 = math.tanh %206 : vector<2x128xf32>
      %cst_47 = arith.constant 1.000000e+00 : f32
      %208 = vector.broadcast %cst_47 : f32 to vector<2x128xf32>
      %209 = arith.subf %208, %204 : vector<2x128xf32>
      %210 = arith.mulf %209, %207 : vector<2x128xf32>
      %211 = arith.mulf %204, %181 : vector<2x128xf32>
      %212 = arith.addf %210, %211 : vector<2x128xf32>
      %213 = vector.extract_strided_slice %23 {offsets = [12, 0], sizes = [2, 384], strides = [1, 1]} : vector<16x384xf32> to vector<2x384xf32>
      %214 = arith.truncf %212 : vector<2x128xf32> to vector<2x128xbf16>
      %cst_48 = arith.constant dense<0.000000e+00> : vector<2x384xf32>
      %215 = tpu.matmul %214, %24, %cst_48 {dimension_numbers = #tpu.dot_dimension_numbers<[1], [0], [0], [1], [0, 0, 1, 1], [], []>} : vector<2x128xbf16>, vector<128x384xbf16>, vector<2x384xf32> -> vector<2x384xf32>
      %216 = vector.broadcast %25 : vector<1x384xf32> to vector<2x384xf32>
      %217 = arith.addf %215, %216 : vector<2x384xf32>
      %218 = vector.extract_strided_slice %213 {offsets = [0, 0], sizes = [2, 128], strides = [1, 1]} : vector<2x384xf32> to vector<2x128xf32>
      %219 = vector.extract_strided_slice %213 {offsets = [0, 128], sizes = [2, 128], strides = [1, 1]} : vector<2x384xf32> to vector<2x128xf32>
      %220 = vector.extract_strided_slice %213 {offsets = [0, 256], sizes = [2, 128], strides = [1, 1]} : vector<2x384xf32> to vector<2x128xf32>
      %221 = vector.extract_strided_slice %217 {offsets = [0, 0], sizes = [2, 128], strides = [1, 1]} : vector<2x384xf32> to vector<2x128xf32>
      %222 = vector.extract_strided_slice %217 {offsets = [0, 128], sizes = [2, 128], strides = [1, 1]} : vector<2x384xf32> to vector<2x128xf32>
      %223 = vector.extract_strided_slice %217 {offsets = [0, 256], sizes = [2, 128], strides = [1, 1]} : vector<2x384xf32> to vector<2x128xf32>
      %224 = arith.addf %218, %221 : vector<2x128xf32>
      %225 = arith.negf %224 : vector<2x128xf32>
      %226 = math.exp %225 : vector<2x128xf32>
      %cst_49 = arith.constant 1.000000e+00 : f32
      %227 = vector.broadcast %cst_49 : f32 to vector<2x128xf32>
      %228 = arith.addf %227, %226 : vector<2x128xf32>
      %229 = arith.divf %227, %228 : vector<2x128xf32>
      %230 = arith.addf %219, %222 : vector<2x128xf32>
      %231 = arith.negf %230 : vector<2x128xf32>
      %232 = math.exp %231 : vector<2x128xf32>
      %cst_50 = arith.constant 1.000000e+00 : f32
      %233 = vector.broadcast %cst_50 : f32 to vector<2x128xf32>
      %234 = arith.addf %233, %232 : vector<2x128xf32>
      %235 = arith.divf %233, %234 : vector<2x128xf32>
      %236 = arith.mulf %229, %223 : vector<2x128xf32>
      %237 = arith.addf %220, %236 : vector<2x128xf32>
      %238 = math.tanh %237 : vector<2x128xf32>
      %cst_51 = arith.constant 1.000000e+00 : f32
      %239 = vector.broadcast %cst_51 : f32 to vector<2x128xf32>
      %240 = arith.subf %239, %235 : vector<2x128xf32>
      %241 = arith.mulf %240, %238 : vector<2x128xf32>
      %242 = arith.mulf %235, %212 : vector<2x128xf32>
      %243 = arith.addf %241, %242 : vector<2x128xf32>
      %244 = vector.extract_strided_slice %23 {offsets = [14, 0], sizes = [2, 384], strides = [1, 1]} : vector<16x384xf32> to vector<2x384xf32>
      %245 = arith.truncf %243 : vector<2x128xf32> to vector<2x128xbf16>
      %cst_52 = arith.constant dense<0.000000e+00> : vector<2x384xf32>
      %246 = tpu.matmul %245, %24, %cst_52 {dimension_numbers = #tpu.dot_dimension_numbers<[1], [0], [0], [1], [0, 0, 1, 1], [], []>} : vector<2x128xbf16>, vector<128x384xbf16>, vector<2x384xf32> -> vector<2x384xf32>
      %247 = vector.broadcast %25 : vector<1x384xf32> to vector<2x384xf32>
      %248 = arith.addf %246, %247 : vector<2x384xf32>
      %249 = vector.extract_strided_slice %244 {offsets = [0, 0], sizes = [2, 128], strides = [1, 1]} : vector<2x384xf32> to vector<2x128xf32>
      %250 = vector.extract_strided_slice %244 {offsets = [0, 128], sizes = [2, 128], strides = [1, 1]} : vector<2x384xf32> to vector<2x128xf32>
      %251 = vector.extract_strided_slice %244 {offsets = [0, 256], sizes = [2, 128], strides = [1, 1]} : vector<2x384xf32> to vector<2x128xf32>
      %252 = vector.extract_strided_slice %248 {offsets = [0, 0], sizes = [2, 128], strides = [1, 1]} : vector<2x384xf32> to vector<2x128xf32>
      %253 = vector.extract_strided_slice %248 {offsets = [0, 128], sizes = [2, 128], strides = [1, 1]} : vector<2x384xf32> to vector<2x128xf32>
      %254 = vector.extract_strided_slice %248 {offsets = [0, 256], sizes = [2, 128], strides = [1, 1]} : vector<2x384xf32> to vector<2x128xf32>
      %255 = arith.addf %249, %252 : vector<2x128xf32>
      %256 = arith.negf %255 : vector<2x128xf32>
      %257 = math.exp %256 : vector<2x128xf32>
      %cst_53 = arith.constant 1.000000e+00 : f32
      %258 = vector.broadcast %cst_53 : f32 to vector<2x128xf32>
      %259 = arith.addf %258, %257 : vector<2x128xf32>
      %260 = arith.divf %258, %259 : vector<2x128xf32>
      %261 = arith.addf %250, %253 : vector<2x128xf32>
      %262 = arith.negf %261 : vector<2x128xf32>
      %263 = math.exp %262 : vector<2x128xf32>
      %cst_54 = arith.constant 1.000000e+00 : f32
      %264 = vector.broadcast %cst_54 : f32 to vector<2x128xf32>
      %265 = arith.addf %264, %263 : vector<2x128xf32>
      %266 = arith.divf %264, %265 : vector<2x128xf32>
      %267 = arith.mulf %260, %254 : vector<2x128xf32>
      %268 = arith.addf %251, %267 : vector<2x128xf32>
      %269 = math.tanh %268 : vector<2x128xf32>
      %cst_55 = arith.constant 1.000000e+00 : f32
      %270 = vector.broadcast %cst_55 : f32 to vector<2x128xf32>
      %271 = arith.subf %270, %266 : vector<2x128xf32>
      %272 = arith.mulf %271, %269 : vector<2x128xf32>
      %273 = arith.mulf %266, %243 : vector<2x128xf32>
      %274 = arith.addf %272, %273 : vector<2x128xf32>
      %275 = arith.truncf %274 : vector<2x128xf32> to vector<2x128xbf16>
      %c0_56 = arith.constant 0 : index
      %c0_57 = arith.constant 0 : index
      %276 = vector.load %arg8[%c0_56, %c0_57] : memref<128x200xbf16, #tpu.memory_space<vmem>>, vector<128x200xbf16>
      %cst_58 = arith.constant dense<0.000000e+00> : vector<2x200xf32>
      %277 = tpu.matmul %275, %276, %cst_58 {dimension_numbers = #tpu.dot_dimension_numbers<[1], [0], [0], [1], [0, 0, 1, 1], [], []>} : vector<2x128xbf16>, vector<128x200xbf16>, vector<2x200xf32> -> vector<2x200xf32>
      %c0_59 = arith.constant 0 : index
      %c0_60 = arith.constant 0 : index
      %278 = vector.load %arg9[%c0_59, %c0_60] : memref<1x200xf32, #tpu.memory_space<vmem>>, vector<1x200xf32>
      %279 = vector.broadcast %278 : vector<1x200xf32> to vector<2x200xf32>
      %280 = arith.addf %277, %279 : vector<2x200xf32>
      %281 = arith.truncf %280 : vector<2x200xf32> to vector<2x200xbf16>
      %c0_61 = arith.constant 0 : index
      %c0_62 = arith.constant 0 : index
      %282 = vector.load %arg10[%c0_61, %c0_62] : memref<200x128xbf16, #tpu.memory_space<vmem>>, vector<200x128xbf16>
      %cst_63 = arith.constant dense<0.000000e+00> : vector<2x128xf32>
      %283 = tpu.matmul %281, %282, %cst_63 {dimension_numbers = #tpu.dot_dimension_numbers<[1], [0], [0], [1], [0, 0, 1, 1], [], []>} : vector<2x200xbf16>, vector<200x128xbf16>, vector<2x128xf32> -> vector<2x128xf32>
      %c0_64 = arith.constant 0 : index
      %c0_65 = arith.constant 0 : index
      %284 = vector.load %arg11[%c0_64, %c0_65] : memref<1x128xf32, #tpu.memory_space<vmem>>, vector<1x128xf32>
      %285 = vector.broadcast %284 : vector<1x128xf32> to vector<2x128xf32>
      %286 = arith.addf %283, %285 : vector<2x128xf32>
      %c0_66 = arith.constant 0 : index
      %c0_67 = arith.constant 0 : index
      %287 = vector.load %arg12[%c0_66, %c0_67] : memref<2x128xf32, #tpu.memory_space<vmem>>, vector<2x128xf32>
      tpu.vector_store %arg12[%c0_66, %c0_67], %286 {strides = array<i32>} : memref<2x128xf32, #tpu.memory_space<vmem>>, vector<2x128xf32>,
    } else {
    }
    return
  }
  func.func @transform_0(%arg0: i32) -> (i32, i32) {
    %c0_i32 = arith.constant 0 : i32
    %c0_i32_0 = arith.constant 0 : i32
    return %c0_i32, %arg0 : i32, i32
  }
  func.func @transform_1(%arg0: i32) -> (i32, i32) {
    %c0_i32 = arith.constant 0 : i32
    %c0_i32_0 = arith.constant 0 : i32
    return %arg0, %c0_i32 : i32, i32
  }
  func.func @transform_2(%arg0: i32) -> (i32, i32) {
    %c0_i32 = arith.constant 0 : i32
    %c0_i32_0 = arith.constant 0 : i32
    %c0_i32_1 = arith.constant 0 : i32
    return %c0_i32, %c0_i32_0 : i32, i32
  }
  func.func @transform_3(%arg0: i32) -> (i32, i32) {
    %c0_i32 = arith.constant 0 : i32
    %c0_i32_0 = arith.constant 0 : i32
    %c0_i32_1 = arith.constant 0 : i32
    return %c0_i32, %c0_i32_0 : i32, i32
  }
  func.func @transform_4(%arg0: i32) -> (i32, i32) {
    %c0_i32 = arith.constant 0 : i32
    %c0_i32_0 = arith.constant 0 : i32
    %c0_i32_1 = arith.constant 0 : i32
    return %c0_i32, %c0_i32_0 : i32, i32
  }
  func.func @transform_5(%arg0: i32) -> (i32, i32) {
    %c0_i32 = arith.constant 0 : i32
    %c0_i32_0 = arith.constant 0 : i32
    %c0_i32_1 = arith.constant 0 : i32
    return %c0_i32, %c0_i32_0 : i32, i32
  }
  func.func @transform_6(%arg0: i32) -> (i32, i32) {
    %c0_i32 = arith.constant 0 : i32
    %c0_i32_0 = arith.constant 0 : i32
    %c0_i32_1 = arith.constant 0 : i32
    return %c0_i32, %c0_i32_0 : i32, i32
  }
  func.func @transform_7(%arg0: i32) -> (i32, i32) {
    %c0_i32 = arith.constant 0 : i32
    %c0_i32_0 = arith.constant 0 : i32
    %c0_i32_1 = arith.constant 0 : i32
    return %c0_i32, %c0_i32_0 : i32, i32
  }
  func.func @transform_8(%arg0: i32) -> (i32, i32) {
    %c0_i32 = arith.constant 0 : i32
    %c0_i32_0 = arith.constant 0 : i32
    %c0_i32_1 = arith.constant 0 : i32
    return %c0_i32, %c0_i32_0 : i32, i32
  }
  func.func @transform_9(%arg0: i32) -> (i32, i32) {
    %c0_i32 = arith.constant 0 : i32
    %c0_i32_0 = arith.constant 0 : i32
    %c0_i32_1 = arith.constant 0 : i32
    return %c0_i32, %c0_i32_0 : i32, i32
  }
  func.func @transform_10(%arg0: i32) -> (i32, i32) {
    %c0_i32 = arith.constant 0 : i32
    %c0_i32_0 = arith.constant 0 : i32
    %c0_i32_1 = arith.constant 0 : i32
    return %c0_i32, %c0_i32_0 : i32, i32
  }
  func.func @transform_11(%arg0: i32) -> (i32, i32) {
    %c0_i32 = arith.constant 0 : i32
    %c0_i32_0 = arith.constant 0 : i32
    %c0_i32_1 = arith.constant 0 : i32
    return %c0_i32, %c0_i32_0 : i32, i32
  }
}

</mosaic_0001>

<bundles_post_ra>
// kernel: ltsm_forward.1
= control target key start
LH: loop header
LB: loop body
LE: loop exit
PB: predicated region body
PF: predicated region fallthrough
CT: control target
= control target key end

     0   :  { %16 = vsyncpa [#allocation5], 0  ;;  %s5327_s0 = inlined_call_operand.vmem [shape: bf16[16,1024], index: 0, kind: input, shape index: {}]   ;;  %s5328_s1 = inlined_call_operand.vmem [shape: bf16[1024,512], index: 1, kind: input, shape index: {}]   ;;  %s5329_s2 = inlined_call_operand.vmem [shape: f32[1,512], index: 2, kind: input, shape index: {}]   ;;  %s5330_s3 = inlined_call_operand.hbm [shape: bf16[512,384], index: 3, kind: input, shape index: {}]   ;;  %s5331_s4 = inlined_call_operand.vmem [shape: f32[1,384], index: 4, kind: input, shape index: {}]   ;;  %s5332_s5 = inlined_call_operand.vmem [shape: bf16[128,384], index: 5, kind: input, shape index: {}]   ;;  %s5333_s6 = inlined_call_operand.vmem [shape: f32[1,384], index: 6, kind: input, shape index: {}]   ;;  %s5334_s7 = inlined_call_operand.vmem [shape: bf16[128,200], index: 7, kind: input, shape index: {}]   ;;  %s5335_s8 = inlined_call_operand.vmem [shape: f32[1,200], index: 8, kind: input, shape index: {}]   ;;  %s5336_s9 = inlined_call_operand.vmem [shape: bf16[200,128], index: 9, kind: input, shape index: {}]   ;;  %s5337_s10 = inlined_call_operand.vmem [shape: f32[1,128], index: 10, kind: input, shape index: {}]   ;;  %s5338_s11 = inlined_call_operand.hbm [shape: f32[2,128], index: 11, kind: output, shape index: {}]  }
   0x1   :  { %17 = vsyncpa [#allocation6], 0  ;;  %s4457_s17 = smov 0   ;;  %s4459_s18 = smov 0  }
   0x2   :  { %s4461_s19 = smov 0  }
   0x3 LB: > { %s4473_s20 = sadd.s32 4294967295, %s4387_s19   ;;  %s4476_s21 = sadd.s32 1, %s4387_s19   ;;  %s4387_s19 = sphi %s4461_s19, %s5346_s19   ;;  %s4383_s18 = sphi %s4459_s18, %s5345_s18   ;;  %s4379_s17 = sphi %s4457_s17, %s5344_s17  }
   0x4   : > { %s27_s22 = ssub.s32 %s4387_s19, %s4476_s21  ;;  %s30_s23 = sadd.s32 1, %s4383_s18 }
   0x5   : > { %p28_p0 = scmp.eq.s32.totalorder %s27_s22, 0  ;;  %p37_p1 = scmp.ne.s32.totalorder %s4383_s18, %s4379_s17 }
   0x6   : > { %p38_p2 = scmp.eq.s32.totalorder %s4387_s19, 0  ;;  %p3330_p3 = scmp.ge.s32.totalorder %s4387_s19, 1 }
   0x7   : > { %s4486_s24 = scalar_select %p28_p0, %s4383_s18, %s30_s23  }
   0x8   : > { %p4488_p4 = por %p38_p2, %p37_p1  ;;  %p290_p5 = scmp.lt.s32.totalorder %s4387_s19, 5 }
   0x9   : > { %5339 = sst [smem:[#allocation10_spill]] %s4486_s24  ;;  %p3871_p7 = scmp.eq.s32.totalorder %s4473_s20, 0 }
   0xa   : > { %p4495_p8 = pnand %p3330_p3, %p290_p5  ;;  %s4389_s27 = smov [#allocation4]  }
   0xb   : > { %s305_s28 = sshll.u32 %s4389_s27, 4  ;;  %s306_s28 = int_to_ptr.vmem [resolvable:$true] %s305_s28 }
   0xc   : > { %p3867_p9 = pneg %p4495_p8  ;;  %s4318_s29 = scalar_lea.vmem %s306_s28, 12288 }
   0xd   : > { %p4319_p12 = scmp.ne.s32.totalorder %s306_s28, %s4318_s29  ;;  %p4326_p1 = scmp.lt.s32.totalorder %s306_s28, %s306_s28 }
   0xe   : > { %p3868_p10 = pnand %p3871_p7, %p3867_p9  ;;  %p4327_p2 = scmp.lt.s32.totalorder %s4318_s29, %s4318_s29 }
  0x10   : > { %p4309_p11 = pneg %p3868_p10  ;;  %p4328_p6 = por %p4327_p2, %p4326_p1 }
  0x12   : > { %p4321_p13 = pnand %p4319_p12, %p4309_p11 }
  0x14   : > { %p4322_p0 = pneg %p4321_p13 }
  0x16   : > { %p4329_p3 = pnand %p4328_p6, %p4322_p0 }
  0x18   : > { %4332 = shalt.err (!%p4329_p3)
}
  0x19   : > { %s4390_s30 = smov 192   ;;  %s4391_s12 = smov 12  }
  0x1a   : > { %3870 = dma.hbm_to_vmem [thread:$0]  (!%p3868_p10), %s5330_s3, 12288, %s306_s28, [#allocation5], %s4390_s30, %s4390_s30, %s4391_s12  }
  0x1b   : > { %p3332_p5 = scmp.ge.s32.totalorder %s4387_s19, 4 }
  0x1d   : > { %336 = sbr.rel (%p3332_p5) target bundleno = 40 (0x28), region = 52 }
  0x22   : > { %339 = sbr.rel (!%p4488_p4) target bundleno = 40 (0x28), region = 56  ;;  %s341_s15 = sand.u32 (%p4488_p4), 1, %s4383_s18  }
  0x23   : > { %s3581_s16 = sshll.u32 (%p4488_p4), %s4387_s19, 3  ;;  %s3333_s22 = sshll.u32 (%p4488_p4), %s341_s15, 4 }
  0x24   : > { %s346_s29 = scalar_lea.vmem (%p4488_p4), %s5327_s0, %s3581_s16  ;;  %s343_s24 = scalar_lea.vmem (%p4488_p4), [#allocation3], %s3333_s22 }
  0x25   : > { %v377_v0 = vld [vmem:[%s346_s29] sm:$0xff] (%p4488_p4) }
  0x26   : > { %v379_v1 = vld [vmem:[%s346_s29 + $0x20] sm:$0xff] (%p4488_p4)  ;;  %378 = vst [vmem:[%s343_s24] sm:$0xff] (%p4488_p4), %v377_v0 }
  0x27   : > { %380 = vst [vmem:[%s343_s24 + $0x8] sm:$0xff] %v379_v1 }
  0x28 PF: > { %399 = sbr.rel (%p4495_p8) target bundleno = 2916 (0xb64), region = 98  ;;  %s402_s25 = sand.u32 (!%p4495_p8), 1, %s4379_s17  }
  0x29   : > { %s4517_s28 = sshll.u32 (!%p4495_p8), %s402_s25, 4 }
  0x2a   : > { %s404_s19 = scalar_lea.vmem (!%p4495_p8), [#allocation3], %s4517_s28 }
  0x2d   : > { %4370 = dma.done.wait (%p3871_p7), [#allocation5], 12288  }
  0x2e   : > { %4372 = vsyncadd (%p3871_p7), [#allocation5], 4294955008  ;;  %s3339_s30 = sshll.u32 %s4473_s20, 5  ;;  %p5342_p6 = scmp.ne.s32.totalorder %s4473_s20, 0 }
  0x2f   : > { %p448_p4 = scmp.lt.s32.totalorder %s3339_s30, 127 }
  0x30   : > { %458 = sbr.rel (%p5342_p6) target bundleno = 58 (0x3a), region = 110 }
  0x31   : > { %s5348_s30 = smov (!%p448_p4, %s3339_s30), 127 }
  0x32   : > { %s3582_s24 = sshll.u32 %s5348_s30, 4 }
  0x33   : > { %s4528_s13 = scalar_lea.vmem %s5328_s1, %s3582_s24 }
  0x35   : > { %v4392_v2 = vmov 0.0  }
  0x36   : > { %459 = vst [vmem:[#allocation2 + $0x30] sm:$0xff] %v4392_v2  ;;  %460 = vst [vmem:[#allocation2] sm:$0xff] %v4392_v2 }
  0x37   : > { %461 = vst [vmem:[#allocation2 + $0x18] sm:$0xff] %v4392_v2  ;;  %462 = vst [vmem:[#allocation2 + $0x10] sm:$0xff] %v4392_v2 }
  0x38   : > { %463 = vst [vmem:[#allocation2 + $0x8] sm:$0xff] %v4392_v2  ;;  %464 = vst [vmem:[#allocation2 + $0x20] sm:$0xff] %v4392_v2 }
  0x39   : > { %465 = vst [vmem:[#allocation2 + $0x28] sm:$0xff] %v4392_v2  ;;  %466 = vst [vmem:[#allocation2 + $0x38] sm:$0xff] %v4392_v2 }
  0x3a PF: > { %v3907_v3 = vld [vmem:[%s4528_s13 + $0xe4] ss:$16 sps:$4 sm:$0xff]   ;;  %v3909_v4 = vld [vmem:[%s4528_s13 + $0xec] ss:$16 sps:$4 sm:$0xff]   ;;  %v3911_v5 = vld [vmem:[%s4528_s13 + $0xe0] ss:$16 sps:$4 sm:$0xff]  }
  0x3b   : > { %871 = vmatprep.subr.bf16.mxu0 %v3907_v3  ;;  %v3912_v6 = vld [vmem:[%s4528_s13 + $0xe8] ss:$16 sps:$4 sm:$0xff]   ;;  %914 = vmatprep.subr.bf16.mxu1 %v3909_v4  ;;  %v3913_v7 = vld [vmem:[%s4528_s13 + $0xc4] ss:$16 sps:$4 sm:$0xff]   ;;  %v3915_v8 = vld [vmem:[%s4528_s13 + $0xcc] ss:$16 sps:$4 sm:$0xff]  }
  0x3c   : > { %872 = vmatpush1.bf16.msra.mxu0 %v3911_v5  ;;  %915 = vmatpush1.bf16.msra.mxu1 %v3912_v6  ;;  %v3917_v9 = vld [vmem:[%s4528_s13 + $0xc0] ss:$16 sps:$4 sm:$0xff]   ;;  %v3918_v10 = vld [vmem:[%s4528_s13 + $0xc8] ss:$16 sps:$4 sm:$0xff]   ;;  %v3919_v11 = vld [vmem:[%s4528_s13 + $0xa4] ss:$16 sps:$4 sm:$0xff]  }
  0x3d   : > { %873 = vmatprep.subr.bf16.mxu0 %v3913_v7  ;;  %916 = vmatprep.subr.bf16.mxu1 %v3915_v8  ;;  %v3921_v12 = vld [vmem:[%s4528_s13 + $0xac] ss:$16 sps:$4 sm:$0xff]   ;;  %v3923_v13 = vld [vmem:[%s4528_s13 + $0xa0] ss:$16 sps:$4 sm:$0xff]   ;;  %v3924_v14 = vld [vmem:[%s4528_s13 + $0xa8] ss:$16 sps:$4 sm:$0xff]  }
  0x3e   : > { %v3925_v15 = vld [vmem:[%s4528_s13 + $0x84] ss:$16 sps:$4 sm:$0xff]   ;;  %v3927_v16 = vld [vmem:[%s4528_s13 + $0x8c] ss:$16 sps:$4 sm:$0xff]   ;;  %v3929_v17 = vld [vmem:[%s4528_s13 + $0x80] ss:$16 sps:$4 sm:$0xff]  }
  0x3f   : > { %v3930_v18 = vld [vmem:[%s4528_s13 + $0x88] ss:$16 sps:$4 sm:$0xff]   ;;  %v3931_v19 = vld [vmem:[%s4528_s13 + $0x64] ss:$16 sps:$4 sm:$0xff]   ;;  %v3933_v20 = vld [vmem:[%s4528_s13 + $0x6c] ss:$16 sps:$4 sm:$0xff]  }
  0x40   : > { %874 = vmatpush1.bf16.msra.mxu0 %v3917_v9  ;;  %917 = vmatpush1.bf16.msra.mxu1 %v3918_v10  ;;  %v3935_v21 = vld [vmem:[%s4528_s13 + $0x60] ss:$16 sps:$4 sm:$0xff]   ;;  %v3936_v22 = vld [vmem:[%s4528_s13 + $0x68] ss:$16 sps:$4 sm:$0xff]   ;;  %v3937_v23 = vld [vmem:[%s4528_s13 + $0x44] ss:$16 sps:$4 sm:$0xff]  }
  0x41   : > { %875 = vmatprep.subr.bf16.mxu0 %v3919_v11  ;;  %918 = vmatprep.subr.bf16.mxu1 %v3921_v12  ;;  %v3939_v24 = vld [vmem:[%s4528_s13 + $0x4c] ss:$16 sps:$4 sm:$0xff]   ;;  %v3941_v25 = vld [vmem:[%s4528_s13 + $0x40] ss:$16 sps:$4 sm:$0xff]   ;;  %v3942_v26 = vld [vmem:[%s4528_s13 + $0x48] ss:$16 sps:$4 sm:$0xff]  }
  0x42   : > { %v3943_v27 = vld [vmem:[%s4528_s13 + $0x24] ss:$16 sps:$4 sm:$0xff]   ;;  %v3945_v28 = vld [vmem:[%s4528_s13 + $0x2c] ss:$16 sps:$4 sm:$0xff]   ;;  %v3947_v29 = vld [vmem:[%s4528_s13 + $0x20] ss:$16 sps:$4 sm:$0xff]  }
  0x43   : > { %v3948_v30 = vld [vmem:[%s4528_s13 + $0x28] ss:$16 sps:$4 sm:$0xff]   ;;  %v3949_v31 = vld [vmem:[%s4528_s13 + $0x4] ss:$16 sps:$4 sm:$0xff]   ;;  %v3951_v32 = vld [vmem:[%s4528_s13 + $0xc] ss:$16 sps:$4 sm:$0xff]  }
  0x44   : > { %876 = vmatpush1.bf16.msra.mxu0 %v3923_v13  ;;  %919 = vmatpush1.bf16.msra.mxu1 %v3924_v14  ;;  %v3953_v33 = vld [vmem:[%s4528_s13] ss:$16 sps:$4 sm:$0xff]   ;;  %v3954_v34 = vld [vmem:[%s4528_s13 + $0x8] ss:$16 sps:$4 sm:$0xff]   ;;  %v3955_v35 = vld [vmem:[%s4528_s13 + $0x1e4] ss:$16 sps:$4 sm:$0xff]  }
  0x45   : > { %877 = vmatprep.subr.bf16.mxu0 %v3925_v15  ;;  %920 = vmatprep.subr.bf16.mxu1 %v3927_v16  ;;  %v3957_v36 = vld [vmem:[%s4528_s13 + $0x1ec] ss:$16 sps:$4 sm:$0xff]   ;;  %v3959_v37 = vld [vmem:[%s4528_s13 + $0x1e0] ss:$16 sps:$4 sm:$0xff]   ;;  %v3960_v38 = vld [vmem:[%s4528_s13 + $0x1e8] ss:$16 sps:$4 sm:$0xff]  }
  0x46   : > { %v3961_v39 = vld [vmem:[%s4528_s13 + $0x1c4] ss:$16 sps:$4 sm:$0xff]   ;;  %v3963_v40 = vld [vmem:[%s4528_s13 + $0x1cc] ss:$16 sps:$4 sm:$0xff]   ;;  %v3965_v41 = vld [vmem:[%s4528_s13 + $0x1c0] ss:$16 sps:$4 sm:$0xff]  }
  0x47   : > { %v3966_v42 = vld [vmem:[%s4528_s13 + $0x1c8] ss:$16 sps:$4 sm:$0xff]   ;;  %v3967_v43 = vld [vmem:[%s4528_s13 + $0x1a4] ss:$16 sps:$4 sm:$0xff]   ;;  %v3969_v44 = vld [vmem:[%s4528_s13 + $0x1ac] ss:$16 sps:$4 sm:$0xff]  }
  0x48   : > { %878 = vmatpush1.bf16.msra.mxu0 %v3929_v17  ;;  %921 = vmatpush1.bf16.msra.mxu1 %v3930_v18  ;;  %v3971_v45 = vld [vmem:[%s4528_s13 + $0x1a0] ss:$16 sps:$4 sm:$0xff]   ;;  %v3972_v46 = vld [vmem:[%s4528_s13 + $0x1a8] ss:$16 sps:$4 sm:$0xff]   ;;  %v3973_v47 = vld [vmem:[%s4528_s13 + $0x184] ss:$16 sps:$4 sm:$0xff]  }
  0x49   : > { %879 = vmatprep.subr.bf16.mxu0 %v3931_v19  ;;  %922 = vmatprep.subr.bf16.mxu1 %v3933_v20  ;;  %v3975_v48 = vld [vmem:[%s4528_s13 + $0x18c] ss:$16 sps:$4 sm:$0xff]   ;;  %v3977_v50 = vld [vmem:[%s4528_s13 + $0x180] ss:$16 sps:$4 sm:$0xff]   ;;  %v3978_v51 = vld [vmem:[%s4528_s13 + $0x188] ss:$16 sps:$4 sm:$0xff]  }
  0x4a   : > { %v4005_v49 = vld [vmem:[%s404_s19 + $0x4] ss:$8 sps:$4 sm:$0xff]   ;;  %v3983_v54 = vld [vmem:[%s4528_s13 + $0x160] ss:$16 sps:$4 sm:$0xff]   ;;  %v3984_v55 = vld [vmem:[%s4528_s13 + $0x168] ss:$16 sps:$4 sm:$0xff]  }
  0x4b   : > { %v3979_v52 = vld [vmem:[%s4528_s13 + $0x164] ss:$16 sps:$4 sm:$0xff]   ;;  %v3981_v53 = vld [vmem:[%s4528_s13 + $0x16c] ss:$16 sps:$4 sm:$0xff]   ;;  %903 = vmatprep.mubr.bf16.mxu0 %v4005_v49  ;;  %946 = vmatprep.mubr.bf16.mxu1 %v4005_v49  ;;  %v3989_v58 = vld [vmem:[%s4528_s13 + $0x140] ss:$16 sps:$4 sm:$0xff]  }
  0x4c   : > { %880 = vmatpush1.bf16.msra.mxu0 %v3935_v21  ;;  %923 = vmatpush1.bf16.msra.mxu1 %v3936_v22  ;;  %v3985_v56 = vld [vmem:[%s4528_s13 + $0x144] ss:$16 sps:$4 sm:$0xff]   ;;  %v3987_v57 = vld [vmem:[%s4528_s13 + $0x14c] ss:$16 sps:$4 sm:$0xff]   ;;  %v3990_v59 = vld [vmem:[%s4528_s13 + $0x148] ss:$16 sps:$4 sm:$0xff]  }
  0x4d   : > { %881 = vmatprep.subr.bf16.mxu0 %v3937_v23  ;;  %924 = vmatprep.subr.bf16.mxu1 %v3939_v24  ;;  %v3991_v60 = vld [vmem:[%s4528_s13 + $0x124] ss:$16 sps:$4 sm:$0xff]   ;;  %v3993_v61 = vld [vmem:[%s4528_s13 + $0x12c] ss:$16 sps:$4 sm:$0xff]   ;;  %v3995_v62 = vld [vmem:[%s4528_s13 + $0x120] ss:$16 sps:$4 sm:$0xff]  }
  0x4e   : > { %v3996_v63 = vld [vmem:[%s4528_s13 + $0x128] ss:$16 sps:$4 sm:$0xff]   ;;  %v3997_v0 = vld [vmem:[%s4528_s13 + $0x104] ss:$16 sps:$4 sm:$0xff]   ;;  %v3999_v1 = vld [vmem:[%s4528_s13 + $0x10c] ss:$16 sps:$4 sm:$0xff]  }
  0x4f   : > { %v4001_v2 = vld [vmem:[%s4528_s13 + $0x100] ss:$16 sps:$4 sm:$0xff]   ;;  %v4002_v3 = vld [vmem:[%s4528_s13 + $0x108] ss:$16 sps:$4 sm:$0xff]   ;;  %p3409_p7 = scmp.ne.s32.totalorder %s4473_s20, 3 }
  0x50   : > { %882 = vmatpush1.bf16.msra.mxu0 %v3941_v25  ;;  %925 = vmatpush1.bf16.msra.mxu1 %v3942_v26  ;;  %v4003_v4 = vld [vmem:[%s404_s19] ss:$8 sps:$4 sm:$0xff]  }
  0x51   : > { %883 = vmatprep.subr.bf16.mxu0 %v3943_v27  ;;  %926 = vmatprep.subr.bf16.mxu1 %v3945_v28  ;;  %v467_v5 = vld [vmem:[#allocation2 + $0x30] sm:$0xff]  ;;  %v469_v6 = vld [vmem:[#allocation2 + $0x18] sm:$0xff]  ;;  %v468_v9 = vld [vmem:[#allocation2] sm:$0xff] }
  0x52   : > { %v470_v10 = vld [vmem:[#allocation2 + $0x10] sm:$0xff]  ;;  %v471_v15 = vld [vmem:[#allocation2 + $0x8] sm:$0xff]  ;;  %v472_v21 = vld [vmem:[#allocation2 + $0x20] sm:$0xff] }
  0x53   : > { %v473_v16 = vld [vmem:[#allocation2 + $0x28] sm:$0xff]  ;;  %v474_v22 = vld [vmem:[#allocation2 + $0x38] sm:$0xff] }
  0x54   : > { %884 = vmatpush1.bf16.msra.mxu0 %v3947_v29  ;;  %927 = vmatpush1.bf16.msra.mxu1 %v3948_v30 }
  0x55   : > { %885 = vmatprep.subr.bf16.mxu0 %v3949_v31  ;;  %928 = vmatprep.subr.bf16.mxu1 %v3951_v32 }
  0x58   : > { %886 = vmatpush1.bf16.msra.mxu0 %v3953_v33  ;;  %929 = vmatpush1.bf16.msra.mxu1 %v3954_v34 }
  0x59   : > { %887 = vmatprep.subr.bf16.mxu0 %v3955_v35  ;;  %930 = vmatprep.subr.bf16.mxu1 %v3957_v36 }
  0x5c   : > { %888 = vmatpush2.bf16.msra.mxu0 %v3959_v37  ;;  %931 = vmatpush2.bf16.msra.mxu1 %v3960_v38 }
  0x5d   : > { %889 = vmatprep.subr.bf16.mxu0 %v3961_v39  ;;  %932 = vmatprep.subr.bf16.mxu1 %v3963_v40 }
  0x60   : > { %890 = vmatpush2.bf16.msra.mxu0 %v3965_v41  ;;  %933 = vmatpush2.bf16.msra.mxu1 %v3966_v42 }
  0x61   : > { %891 = vmatprep.subr.bf16.mxu0 %v3967_v43  ;;  %934 = vmatprep.subr.bf16.mxu1 %v3969_v44 }
  0x64   : > { %892 = vmatpush2.bf16.msra.mxu0 %v3971_v45  ;;  %935 = vmatpush2.bf16.msra.mxu1 %v3972_v46 }
  0x65   : > { %893 = vmatprep.subr.bf16.mxu0 %v3973_v47  ;;  %936 = vmatprep.subr.bf16.mxu1 %v3975_v48 }
  0x68   : > { %894 = vmatpush2.bf16.msra.mxu0 %v3977_v50  ;;  %937 = vmatpush2.bf16.msra.mxu1 %v3978_v51 }
  0x69   : > { %895 = vmatprep.subr.bf16.mxu0 %v3979_v52  ;;  %938 = vmatprep.subr.bf16.mxu1 %v3981_v53 }
  0x6c   : > { %896 = vmatpush2.bf16.msra.mxu0 %v3983_v54  ;;  %939 = vmatpush2.bf16.msra.mxu1 %v3984_v55 }
  0x6d   : > { %897 = vmatprep.subr.bf16.mxu0 %v3985_v56  ;;  %940 = vmatprep.subr.bf16.mxu1 %v3987_v57 }
  0x70   : > { %898 = vmatpush2.bf16.msra.mxu0 %v3989_v58  ;;  %941 = vmatpush2.bf16.msra.mxu1 %v3990_v59 }
  0x71   : > { %899 = vmatprep.subr.bf16.mxu0 %v3991_v60  ;;  %942 = vmatprep.subr.bf16.mxu1 %v3993_v61 }
  0x74   : > { %900 = vmatpush2.bf16.msra.mxu0 %v3995_v62  ;;  %943 = vmatpush2.bf16.msra.mxu1 %v3996_v63 }
  0x75   : > { %901 = vmatprep.subr.bf16.mxu0 %v3997_v0  ;;  %944 = vmatprep.subr.bf16.mxu1 %v3999_v1 }
  0x78   : > { %902 = vmatpush2.bf16.msra.mxu0 %v4001_v2  ;;  %945 = vmatpush2.bf16.msra.mxu1 %v4002_v3 }
  0x7b   : > { %904 = vmatmul.mubr.bf16.vlgmr.msra.gmra.mxu0 %v4003_v4  ;;  %947 = vmatmul.mubr.bf16.vlgmr.msra.gmra.mxu1 %v4003_v4 }
 0x13b   : > { %v905_v7 = vpop.f32.mrf.mxu0  ;;  %v948_v8 = vpop.f32.mrf.mxu1 }
 0x13c   : > { %v957_v11 = vadd.f32 %v905_v7, %v467_v5  ;;  %v959_v12 = vadd.f32 %v948_v8, %v469_v6 }
 0x13d   : > { %v907_v13 = vpop.f32.mrf.mxu0  ;;  %v950_v14 = vpop.f32.mrf.mxu1 }
 0x13e   : > { %965 = vst [vmem:[#allocation2 + $0x30] sm:$0xff] %v957_v11  ;;  %967 = vst [vmem:[#allocation2 + $0x18] sm:$0xff] %v959_v12  ;;  %v958_v17 = vadd.f32 %v907_v13, %v468_v9  ;;  %v960_v18 = vadd.f32 %v950_v14, %v470_v10 }
 0x13f   : > { %v909_v19 = vpop.f32.mrf.mxu0  ;;  %v952_v20 = vpop.f32.mrf.mxu1 }
 0x140   : > { %966 = vst [vmem:[#allocation2] sm:$0xff] %v958_v17  ;;  %968 = vst [vmem:[#allocation2 + $0x10] sm:$0xff] %v960_v18  ;;  %v961_v23 = vadd.f32 %v909_v19, %v471_v15  ;;  %v963_v24 = vadd.f32 %v952_v20, %v473_v16  ;;  %976 = sbr.rel (%p3409_p7) target bundleno = 2901 (0xb55), region = 114 }
 0x141   : > { %v911_v25 = vpop.f32.mrf.mxu0  ;;  %v954_v26 = vpop.f32.mrf.mxu1 }
 0x142   : > { %969 = vst [vmem:[#allocation2 + $0x8] sm:$0xff] %v961_v23  ;;  %971 = vst [vmem:[#allocation2 + $0x28] sm:$0xff] %v963_v24  ;;  %v962_v27 = vadd.f32 %v911_v25, %v472_v21  ;;  %v964_v28 = vadd.f32 %v954_v26, %v474_v22 }
 0x144   : > { %970 = vst [vmem:[#allocation2 + $0x20] sm:$0xff] %v962_v27  ;;  %972 = vst [vmem:[#allocation2 + $0x38] sm:$0xff] %v964_v28 }
 0x145   : > { %v4006_v29 = vld [vmem:[#allocation4 + $0xac] ss:$12 sps:$4 sm:$0xff]   ;;  %v4008_v30 = vld [vmem:[#allocation4 + $0xa8] ss:$12 sps:$4 sm:$0xff]   ;;  %v4014_v34 = vld [vmem:[#allocation4 + $0x90] ss:$12 sps:$4 sm:$0xff]   ;;  %v987_v1 = vlaneseq }
 0x146   : > { %1684 = vmatprep.subr.bf16.mxu0 %v4006_v29  ;;  %v4009_v31 = vld [vmem:[#allocation4 + $0x22c] ss:$12 sps:$4 sm:$0xff]   ;;  %v4011_v32 = vld [vmem:[#allocation4 + $0x228] ss:$12 sps:$4 sm:$0xff]   ;;  %v4017_v36 = vld [vmem:[#allocation4 + $0x210] ss:$12 sps:$4 sm:$0xff]  }
 0x147   : > { %1685 = vmatpush1.bf16.msra.mxu0 %v4008_v30  ;;  %v4012_v33 = vld [vmem:[#allocation4 + $0x94] ss:$12 sps:$4 sm:$0xff]   ;;  %1727 = vmatprep.subr.bf16.mxu1 %v4009_v31  ;;  %v4018_v37 = vld [vmem:[#allocation4 + $0x7c] ss:$12 sps:$4 sm:$0xff]   ;;  %v4020_v38 = vld [vmem:[#allocation4 + $0x78] ss:$12 sps:$4 sm:$0xff]  }
 0x148   : > { %v4015_v35 = vld [vmem:[#allocation4 + $0x214] ss:$12 sps:$4 sm:$0xff]   ;;  %1728 = vmatpush1.bf16.msra.mxu1 %v4011_v32  ;;  %1686 = vmatprep.subr.bf16.mxu0 %v4012_v33  ;;  %v4021_v39 = vld [vmem:[#allocation4 + $0x1fc] ss:$12 sps:$4 sm:$0xff]   ;;  %v4024_v40 = vld [vmem:[#allocation4 + $0x64] ss:$12 sps:$4 sm:$0xff]  }
 0x149   : > { %1729 = vmatprep.subr.bf16.mxu1 %v4015_v35  ;;  %v4023_v41 = vld [vmem:[#allocation4 + $0x1f8] ss:$12 sps:$4 sm:$0xff]   ;;  %v4026_v43 = vld [vmem:[#allocation4 + $0x60] ss:$12 sps:$4 sm:$0xff]   ;;  %v4032_v47 = vld [vmem:[#allocation4 + $0x48] ss:$12 sps:$4 sm:$0xff]  }
 0x14a   : > { %v4027_v42 = vld [vmem:[#allocation4 + $0x1e4] ss:$12 sps:$4 sm:$0xff]   ;;  %v4030_v44 = vld [vmem:[#allocation4 + $0x4c] ss:$12 sps:$4 sm:$0xff]   ;;  %v4036_v48 = vld [vmem:[#allocation4 + $0x34] ss:$12 sps:$4 sm:$0xff]  }
 0x14b   : > { %1687 = vmatpush1.bf16.msra.mxu0 %v4014_v34  ;;  %v4029_v45 = vld [vmem:[#allocation4 + $0x1e0] ss:$12 sps:$4 sm:$0xff]   ;;  %v4035_v49 = vld [vmem:[#allocation4 + $0x1c8] ss:$12 sps:$4 sm:$0xff]   ;;  %v4038_v51 = vld [vmem:[#allocation4 + $0x30] ss:$12 sps:$4 sm:$0xff]  }
 0x14c   : > { %1688 = vmatprep.subr.bf16.mxu0 %v4018_v37  ;;  %1730 = vmatpush1.bf16.msra.mxu1 %v4017_v36  ;;  %v4033_v46 = vld [vmem:[#allocation4 + $0x1cc] ss:$12 sps:$4 sm:$0xff]   ;;  %v4039_v50 = vld [vmem:[#allocation4 + $0x1b4] ss:$12 sps:$4 sm:$0xff]   ;;  %v4042_v52 = vld [vmem:[#allocation4 + $0x1c] ss:$12 sps:$4 sm:$0xff]  }
 0x14d   : > { %1731 = vmatprep.subr.bf16.mxu1 %v4021_v39  ;;  %v4041_v53 = vld [vmem:[#allocation4 + $0x1b0] ss:$12 sps:$4 sm:$0xff]   ;;  %v4044_v55 = vld [vmem:[#allocation4 + $0x18] ss:$12 sps:$4 sm:$0xff]   ;;  %v4050_v59 = vld [vmem:[#allocation4] ss:$12 sps:$4 sm:$0xff]  }
 0x14e   : > { %v4045_v54 = vld [vmem:[#allocation4 + $0x19c] ss:$12 sps:$4 sm:$0xff]   ;;  %v4048_v56 = vld [vmem:[#allocation4 + $0x4] ss:$12 sps:$4 sm:$0xff]   ;;  %v4054_v60 = vld [vmem:[#allocation4 + $0x16c] ss:$12 sps:$4 sm:$0xff]  }
 0x14f   : > { %1689 = vmatpush1.bf16.msra.mxu0 %v4020_v38  ;;  %v4047_v57 = vld [vmem:[#allocation4 + $0x198] ss:$12 sps:$4 sm:$0xff]   ;;  %v4053_v61 = vld [vmem:[#allocation4 + $0x180] ss:$12 sps:$4 sm:$0xff]   ;;  %v4056_v63 = vld [vmem:[#allocation4 + $0x168] ss:$12 sps:$4 sm:$0xff]  }
 0x150   : > { %1690 = vmatprep.subr.bf16.mxu0 %v4024_v40  ;;  %1732 = vmatpush1.bf16.msra.mxu1 %v4023_v41  ;;  %v4051_v58 = vld [vmem:[#allocation4 + $0x184] ss:$12 sps:$4 sm:$0xff]   ;;  %v4057_v62 = vld [vmem:[#allocation4 + $0x2ec] ss:$12 sps:$4 sm:$0xff]   ;;  %v4060_v0 = vld [vmem:[#allocation4 + $0x154] ss:$12 sps:$4 sm:$0xff]  }
 0x151   : > { %1733 = vmatprep.subr.bf16.mxu1 %v4027_v42  ;;  %v4059_v2 = vld [vmem:[#allocation4 + $0x2e8] ss:$12 sps:$4 sm:$0xff]   ;;  %v4062_v4 = vld [vmem:[#allocation4 + $0x150] ss:$12 sps:$4 sm:$0xff]   ;;  %v988_v6 = vshrl.u32 %v987_v1, 7  ;;  %v978_v16 = vld [vmem:[#allocation2] sm:$0xff] }
 0x152   : > { %v4063_v3 = vld [vmem:[#allocation4 + $0x2d4] ss:$12 sps:$4 sm:$0xff]   ;;  %v4066_v5 = vld [vmem:[#allocation4 + $0x13c] ss:$12 sps:$4 sm:$0xff]   ;;  %v4068_v9 = vld [vmem:[#allocation4 + $0x138] ss:$12 sps:$4 sm:$0xff]  }
 0x153   : > { %1691 = vmatpush1.bf16.msra.mxu0 %v4026_v43  ;;  %v4065_v7 = vld [vmem:[#allocation4 + $0x2d0] ss:$12 sps:$4 sm:$0xff]   ;;  %v4601_v11 = vsub.s32 1, %v988_v6  ;;  %v1001_v12 = vsub.s32 3, %v988_v6  ;;  %v4071_v13 = vld [vmem:[#allocation4 + $0x2b8] ss:$12 sps:$4 sm:$0xff]  }
 0x154   : > { %1692 = vmatprep.subr.bf16.mxu0 %v4030_v44  ;;  %1734 = vmatpush1.bf16.msra.mxu1 %v4029_v45  ;;  %v4069_v8 = vld [vmem:[#allocation4 + $0x2bc] ss:$12 sps:$4 sm:$0xff]   ;;  %v4072_v10 = vld [vmem:[#allocation4 + $0x124] ss:$12 sps:$4 sm:$0xff]   ;;  %v4074_v14 = vld [vmem:[#allocation4 + $0x120] ss:$12 sps:$4 sm:$0xff]  }
 0x155   : > { %1735 = vmatprep.subr.bf16.mxu1 %v4033_v46  ;;  %v4075_v15 = vld [vmem:[#allocation4 + $0x2a4] ss:$12 sps:$4 sm:$0xff]   ;;  %v985_v18 = vld [vmem:[%s5329_s2] sm:$0xf]  ;;  %v4078_v19 = vld [vmem:[#allocation4 + $0x10c] ss:$12 sps:$4 sm:$0xff]  }
 0x156   : > { %v982_v17 = vld [vmem:[#allocation2 + $0x20] sm:$0xff]  ;;  %v994_v20 = vrot.slane %v985_v18, %v4601_v11  ;;  %v1002_v21 = vrot.slane %v985_v18, %v1001_v12  ;;  %v4607_v23 = vsub.s32 0, %v988_v6  ;;  %v980_v24 = vld [vmem:[#allocation2 + $0x10] sm:$0xff]  ;;  %v984_v25 = vld [vmem:[#allocation2 + $0x38] sm:$0xff]  ;;  %v4609_v33 = vsub.s32 2, %v988_v6 }
 0x157   : > { %1693 = vmatpush1.bf16.msra.mxu0 %v4032_v47  ;;  %v4077_v22 = vld [vmem:[#allocation4 + $0x2a0] ss:$12 sps:$4 sm:$0xff]   ;;  %v4080_v29 = vld [vmem:[#allocation4 + $0x108] ss:$12 sps:$4 sm:$0xff]   ;;  %v4086_v37 = vld [vmem:[#allocation4 + $0xf0] ss:$12 sps:$4 sm:$0xff]  }
 0x158   : > { %1694 = vmatprep.subr.bf16.mxu0 %v4036_v48  ;;  %1736 = vmatpush1.bf16.msra.mxu1 %v4035_v49  ;;  %v4081_v26 = vld [vmem:[#allocation4 + $0x28c] ss:$12 sps:$4 sm:$0xff]   ;;  %v1008_v27 = vadd.f32 %v994_v20, %v978_v16  ;;  %v1012_v28 = vadd.f32 %v994_v20, %v982_v17  ;;  %v4083_v30 = vld [vmem:[#allocation4 + $0x288] ss:$12 sps:$4 sm:$0xff]   ;;  %v1010_v31 = vadd.f32 %v1002_v21, %v980_v24  ;;  %v4089_v45 = vld [vmem:[#allocation4 + $0x270] ss:$12 sps:$4 sm:$0xff]  }
 0x159   : > { %1737 = vmatprep.subr.bf16.mxu1 %v4039_v50  ;;  %v1014_v32 = vadd.f32 %v1002_v21, %v984_v25  ;;  %v4084_v34 = vld [vmem:[#allocation4 + $0xf4] ss:$12 sps:$4 sm:$0xff]   ;;  %v4090_v41 = vld [vmem:[#allocation4 + $0xdc] ss:$12 sps:$4 sm:$0xff]   ;;  %v990_v44 = vrot.slane %v985_v18, %v4607_v23  ;;  %v998_v49 = vrot.slane %v985_v18, %v4609_v33  ;;  %v4092_v50 = vld [vmem:[#allocation4 + $0xd8] ss:$12 sps:$4 sm:$0xff]  }
 0x15a   : > { %v1016_v35 = vmax.f32 %v1008_v27, 0.0  ;;  %v1020_v36 = vmax.f32 %v1012_v28, 0.0  ;;  %v4087_v38 = vld [vmem:[#allocation4 + $0x274] ss:$12 sps:$4 sm:$0xff]   ;;  %v1018_v39 = vmax.f32 %v1010_v31, 0.0  ;;  %v981_v46 = vld [vmem:[#allocation2 + $0x8] sm:$0xff] }
 0x15b   : > { %1695 = vmatpush1.bf16.msra.mxu0 %v4038_v51  ;;  %v1022_v40 = vmax.f32 %v1014_v32, 0.0  ;;  %v977_v43 = vld [vmem:[#allocation2 + $0x30] sm:$0xff]  ;;  %v979_v48 = vld [vmem:[#allocation2 + $0x18] sm:$0xff]  ;;  %v983_v51 = vld [vmem:[#allocation2 + $0x28] sm:$0xff]  ;;  %vm4395_vm0 = vmmov 0   ;;  %vm3208_vm1 = vcmask 1043456  }
 0x15c   : > { %1696 = vmatprep.subr.bf16.mxu0 %v4042_v52  ;;  %1738 = vmatpush1.bf16.msra.mxu1 %v4041_v53  ;;  %v1024_v42 = vpack.c.bf16 %v1020_v36, %v1016_v35  ;;  %v4093_v52 = vld [vmem:[#allocation4 + $0x25c] ss:$12 sps:$4 sm:$0xff]   ;;  %v1007_v53 = vadd.f32 %v990_v44, %v977_v43  ;;  %v4110_v12 = vld [vmem:[#allocation4 + $0x140] ss:$12 sps:$4 sm:$0xff]   ;;  %v4122_v25 = vld [vmem:[#allocation4 + $0xf8] ss:$12 sps:$4 sm:$0xff]  }
 0x15d   : > { %1739 = vmatprep.subr.bf16.mxu1 %v4045_v54  ;;  %v1026_v47 = vpack.c.bf16 %v1022_v40, %v1018_v39  ;;  %v1011_v54 = vadd.f32 %v990_v44, %v981_v46  ;;  %v4114_v16 = vld [vmem:[#allocation4 + $0x128] ss:$12 sps:$4 sm:$0xff]   ;;  %v4113_v17 = vld [vmem:[#allocation4 + $0x200] ss:$12 sps:$4 sm:$0xff]   ;;  %v4118_v20 = vld [vmem:[#allocation4 + $0x110] ss:$12 sps:$4 sm:$0xff]  }
 0x15e   : > { %1716 = vmatprep.mubr.bf16.mxu0 %v1024_v42  ;;  %v4116_v18 = vld [vmem:[#allocation4 + $0x2a8] ss:$12 sps:$4 sm:$0xff]   ;;  %v4119_v24 = vld [vmem:[#allocation4 + $0x50] ss:$12 sps:$4 sm:$0xff]   ;;  %v4124_v27 = vld [vmem:[#allocation4 + $0x278] ss:$12 sps:$4 sm:$0xff]  }
 0x15f   : > { %1697 = vmatpush1.bf16.msra.mxu0 %v4044_v55  ;;  %1759 = vmatprep.mubr.bf16.mxu1 %v1026_v47  ;;  %v4095_v55 = vld [vmem:[#allocation4 + $0x258] ss:$12 sps:$4 sm:$0xff]   ;;  %v4117_v21 = vld [vmem:[#allocation4 + $0x1e8] ss:$12 sps:$4 sm:$0xff]   ;;  %v4128_v31 = vld [vmem:[#allocation4 + $0x260] ss:$12 sps:$4 sm:$0xff]  }
 0x160   : > { %1698 = vmatprep.subr.bf16.mxu0 %v4048_v56  ;;  %1740 = vmatpush1.bf16.msra.mxu1 %v4047_v57  ;;  %v4096_v56 = vld [vmem:[#allocation4 + $0xc4] ss:$12 sps:$4 sm:$0xff]   ;;  %v1009_v57 = vadd.f32 %v998_v49, %v979_v48  ;;  %v4127_v32 = vld [vmem:[#allocation4 + $0x20] ss:$12 sps:$4 sm:$0xff]   ;;  %v4132_v36 = vld [vmem:[#allocation4 + $0x248] ss:$12 sps:$4 sm:$0xff]  }
 0x161   : > { %1741 = vmatprep.subr.bf16.mxu1 %v4051_v58  ;;  %v1013_v58 = vadd.f32 %v998_v49, %v983_v51  ;;  %v4123_v28 = vld [vmem:[#allocation4 + $0x38] ss:$12 sps:$4 sm:$0xff]   ;;  %v4129_v35 = vld [vmem:[#allocation4 + $0x1a0] ss:$12 sps:$4 sm:$0xff]   ;;  %v4133_v39 = vld [vmem:[#allocation4 + $0x188] ss:$12 sps:$4 sm:$0xff]  }
 0x162   : > { %v4627_v40 = vld [vmem:[%s5332_s5 + $0xa8] ss:$12 sps:$4 sm:$0xff]   ;;  %v4643_v43 = vld [vmem:[%s5332_s5 + $0xb0] ss:$12 sps:$4 sm:$0xff]   ;;  %v4394_v46 = vmov 0   ;;  %vm3204_vm2 = vcmask 588800  }
 0x163   : > { %1699 = vmatpush1.bf16.msra.mxu0 %v4050_v59  ;;  %v4098_v59 = vld [vmem:[#allocation4 + $0xc0] ss:$12 sps:$4 sm:$0xff]   ;;  %v1021_v1 = vmax.f32 %v1013_v58, 0.0  ;;  %v4649_v44 = vld [vmem:[%s5332_s5 + $0x7c] ss:$12 sps:$4 sm:$0xff]  }
 0x164   : > { %1700 = vmatprep.subr.bf16.mxu0 %v4054_v60  ;;  %1742 = vmatpush1.bf16.msra.mxu1 %v4053_v61  ;;  %v4099_v60 = vld [vmem:[#allocation4 + $0x244] ss:$12 sps:$4 sm:$0xff]   ;;  %v1015_v61 = vmax.f32 %v1007_v53, 0.0  ;;  %v4685_v51 = vld [vmem:[%s5332_s5 + $0x60] ss:$12 sps:$4 sm:$0xff]  }
 0x165   : > { %1743 = vmatprep.subr.bf16.mxu1 %v4057_v62  ;;  %v1019_v62 = vmax.f32 %v1011_v54, 0.0  ;;  %v4664_v48 = vld [vmem:[%s5332_s5 + $0x78] ss:$12 sps:$4 sm:$0xff]   ;;  %v4698_v53 = vld [vmem:[%s5332_s5 + $0x68] ss:$12 sps:$4 sm:$0xff]  }
 0x166   : > { %v4672_v49 = vld [vmem:[%s5332_s5 + $0x64] ss:$12 sps:$4 sm:$0xff]   ;;  %v4704_v54 = vld [vmem:[%s5332_s5 + $0x48] ss:$12 sps:$4 sm:$0xff]  }
 0x167   : > { %1701 = vmatpush2.bf16.msra.mxu0 %v4056_v63  ;;  %v4102_v63 = vld [vmem:[#allocation4 + $0x170] ss:$12 sps:$4 sm:$0xff]  }
 0x168   : > { %1702 = vmatprep.subr.bf16.mxu0 %v4060_v0  ;;  %1744 = vmatpush2.bf16.msra.mxu1 %v4059_v2  ;;  %v1017_v0 = vmax.f32 %v1009_v57, 0.0  ;;  %v4101_v2 = vld [vmem:[#allocation4 + $0x240] ss:$12 sps:$4 sm:$0xff]   ;;  %v4726_v57 = vld [vmem:[%s5332_s5 + $0x30] ss:$12 sps:$4 sm:$0xff]  }
 0x169   : > { %1745 = vmatprep.subr.bf16.mxu1 %v4063_v3  ;;  %v4613_v3 = vpack.c.bf16 %v1019_v62, %v1015_v61  ;;  %v4732_v58 = vld [vmem:[%s5332_s5 + $0x1c] ss:$12 sps:$4 sm:$0xff]   ;;  %v4751_v61 = vld [vmem:[%s5332_s5 + $0x4] ss:$12 sps:$4 sm:$0xff]   ;;  %v4757_v62 = vld [vmem:[%s5332_s5 + $0x20] ss:$12 sps:$4 sm:$0xff]  }
 0x16a   : > { %v4615_v6 = vpack.c.bf16 %v1021_v1, %v1017_v0  ;;  %v4771_v0 = vld [vmem:[%s5332_s5 + $0x8] ss:$12 sps:$4 sm:$0xff]   ;;  %v1155_v1 = vld [vmem:[%s5331_s4] sm:$0x7] }
 0x16b   : > { %1703 = vmatpush2.bf16.msra.mxu0 %v4062_v4  ;;  %v4104_v4 = vld [vmem:[#allocation4 + $0x2f0] ss:$12 sps:$4 sm:$0xff]  }
 0x16c   : > { %1704 = vmatprep.subr.bf16.mxu0 %v4066_v5  ;;  %1746 = vmatpush2.bf16.msra.mxu1 %v4065_v7  ;;  %v4103_v5 = vld [vmem:[#allocation4 + $0xb0] ss:$12 sps:$4 sm:$0xff]   ;;  %v4106_v7 = vld [vmem:[#allocation4 + $0x158] ss:$12 sps:$4 sm:$0xff]  }
 0x16d   : > { %1747 = vmatprep.subr.bf16.mxu1 %v4069_v8  ;;  %v4105_v8 = vld [vmem:[#allocation4 + $0x230] ss:$12 sps:$4 sm:$0xff]  }
 0x16f   : > { %1705 = vmatpush2.bf16.msra.mxu0 %v4068_v9  ;;  %v4108_v9 = vld [vmem:[#allocation4 + $0x2d8] ss:$12 sps:$4 sm:$0xff]  }
 0x170   : > { %1706 = vmatprep.subr.bf16.mxu0 %v4072_v10  ;;  %1748 = vmatpush2.bf16.msra.mxu1 %v4071_v13  ;;  %v4107_v10 = vld [vmem:[#allocation4 + $0x98] ss:$12 sps:$4 sm:$0xff]  }
 0x171   : > { %1749 = vmatprep.subr.bf16.mxu1 %v4075_v15  ;;  %v4109_v13 = vld [vmem:[#allocation4 + $0x218] ss:$12 sps:$4 sm:$0xff]   ;;  %v4111_v15 = vld [vmem:[#allocation4 + $0x80] ss:$12 sps:$4 sm:$0xff]  }
 0x173   : > { %1707 = vmatpush2.bf16.msra.mxu0 %v4074_v14  ;;  %v4112_v14 = vld [vmem:[#allocation4 + $0x2c0] ss:$12 sps:$4 sm:$0xff]  }
 0x174   : > { %1708 = vmatprep.subr.bf16.mxu0 %v4078_v19  ;;  %1750 = vmatpush2.bf16.msra.mxu1 %v4077_v22  ;;  %v4115_v19 = vld [vmem:[#allocation4 + $0x68] ss:$12 sps:$4 sm:$0xff]   ;;  %v4120_v22 = vld [vmem:[#allocation4 + $0x290] ss:$12 sps:$4 sm:$0xff]  }
 0x175   : > { %1751 = vmatprep.subr.bf16.mxu1 %v4081_v26  ;;  %v4121_v26 = vld [vmem:[#allocation4 + $0x1d0] ss:$12 sps:$4 sm:$0xff]  }
 0x177   : > { %1709 = vmatpush2.bf16.msra.mxu0 %v4080_v29  ;;  %v4126_v29 = vld [vmem:[#allocation4 + $0xe0] ss:$12 sps:$4 sm:$0xff]  }
 0x178   : > { %1710 = vmatprep.subr.bf16.mxu0 %v4084_v34  ;;  %1752 = vmatpush2.bf16.msra.mxu1 %v4083_v30  ;;  %v4125_v30 = vld [vmem:[#allocation4 + $0x1b8] ss:$12 sps:$4 sm:$0xff]   ;;  %v4130_v34 = vld [vmem:[#allocation4 + $0xc8] ss:$12 sps:$4 sm:$0xff]  }
 0x179   : > { %1753 = vmatprep.subr.bf16.mxu1 %v4087_v38  ;;  %v4622_v38 = vld [vmem:[%s5332_s5 + $0xac] ss:$12 sps:$4 sm:$0xff]  }
 0x17b   : > { %1711 = vmatpush2.bf16.msra.mxu0 %v4086_v37  ;;  %v4131_v37 = vld [vmem:[#allocation4 + $0x8] ss:$12 sps:$4 sm:$0xff]  }
 0x17c   : > { %1712 = vmatprep.subr.bf16.mxu0 %v4090_v41  ;;  %1754 = vmatpush2.bf16.msra.mxu1 %v4089_v45  ;;  %v4633_v41 = vld [vmem:[%s5332_s5 + $0x94] ss:$12 sps:$4 sm:$0xff]   ;;  %v4393_v45 = vmov 0.0  }
 0x17d   : > { %1755 = vmatprep.subr.bf16.mxu1 %v4093_v52  ;;  %v4691_v52 = vld [vmem:[%s5332_s5 + $0x4c] ss:$12 sps:$4 sm:$0xff]  }
 0x17f   : > { %1713 = vmatpush2.bf16.msra.mxu0 %v4092_v50  ;;  %v4679_v50 = vld [vmem:[%s5332_s5 + $0x80] ss:$12 sps:$4 sm:$0xff]  }
 0x180   : > { %1714 = vmatprep.subr.bf16.mxu0 %v4096_v56  ;;  %1756 = vmatpush2.bf16.msra.mxu1 %v4095_v55  ;;  %v4713_v55 = vld [vmem:[%s5332_s5 + $0x34] ss:$12 sps:$4 sm:$0xff]   ;;  %v4719_v56 = vld [vmem:[%s5332_s5 + $0x50] ss:$12 sps:$4 sm:$0xff]  }
 0x181   : > { %1757 = vmatprep.subr.bf16.mxu1 %v4099_v60  ;;  %v4745_v60 = vld [vmem:[%s5332_s5 + $0x18] ss:$12 sps:$4 sm:$0xff]  }
 0x183   : > { %1715 = vmatpush2.bf16.msra.mxu0 %v4098_v59  ;;  %v4738_v59 = vld [vmem:[%s5332_s5 + $0x38] ss:$12 sps:$4 sm:$0xff]  }
 0x184   : > { %3583 = vmatprep.subr.bf16.mxu0 %v4102_v63  ;;  %1758 = vmatpush2.bf16.msra.mxu1 %v4101_v2  ;;  %v4764_v63 = vld [vmem:[%s5332_s5] ss:$12 sps:$4 sm:$0xff]  }
 0x185   : > { %3605 = vmatprep.subr.bf16.mxu1 %v4104_v4 }
 0x186   : > { %1717 = vmatmul.mubr.bf16.vlgmr.msra.gmra.mxu0 %v4613_v3 }
 0x187   : > { %3584 = vmatpush3.bf16.msra.mxu0 %v4103_v5  ;;  %1802 = vmatprep.mubr.bf16.mxu0 %v1024_v42  ;;  %v4638_v42 = vld [vmem:[%s5332_s5 + $0x90] ss:$12 sps:$4 sm:$0xff]   ;;  %v1160_v5 = vrot.slane %v1155_v1, %v4607_v23 }
 0x188   : > { %1760 = vmatmul.mubr.bf16.vlgmr.msra.gmra.mxu1 %v4615_v6  ;;  %3585 = vmatprep.subr.bf16.mxu0 %v4106_v7 }
 0x189   : > { %3606 = vmatpush3.bf16.msra.mxu1 %v4105_v8  ;;  %1843 = vmatprep.mubr.bf16.mxu1 %v1026_v47  ;;  %v4657_v47 = vld [vmem:[%s5332_s5 + $0x98] ss:$12 sps:$4 sm:$0xff]   ;;  %v1164_v8 = vrot.slane %v1155_v1, %v4601_v11 }
 0x18a   : > { %3607 = vmatprep.subr.bf16.mxu1 %v4108_v9 }
 0x18b   : > { %3586 = vmatpush3.bf16.msra.mxu0 %v4107_v10 }
 0x18c   : > { %3587 = vmatprep.subr.bf16.mxu0 %v4110_v12 }
 0x18d   : > { %3608 = vmatpush3.bf16.msra.mxu1 %v4109_v13 }
 0x18e   : > { %3609 = vmatprep.subr.bf16.mxu1 %v4112_v14 }
 0x18f   : > { %3588 = vmatpush3.bf16.msra.mxu0 %v4111_v15 }
 0x190   : > { %3589 = vmatprep.subr.bf16.mxu0 %v4114_v16 }
 0x191   : > { %3610 = vmatpush3.bf16.msra.mxu1 %v4113_v17 }
 0x192   : > { %3611 = vmatprep.subr.bf16.mxu1 %v4116_v18 }
 0x193   : > { %3590 = vmatpush3.bf16.msra.mxu0 %v4115_v19 }
 0x194   : > { %3591 = vmatprep.subr.bf16.mxu0 %v4118_v20 }
 0x195   : > { %3612 = vmatpush3.bf16.msra.mxu1 %v4117_v21 }
 0x196   : > { %3613 = vmatprep.subr.bf16.mxu1 %v4120_v22 }
 0x197   : > { %3592 = vmatpush3.bf16.msra.mxu0 %v4119_v24 }
 0x198   : > { %3593 = vmatprep.subr.bf16.mxu0 %v4122_v25  ;;  %v1168_v25 = vrot.slane %v1155_v1, %v4609_v33 }
 0x199   : > { %3614 = vmatpush3.bf16.msra.mxu1 %v4121_v26 }
 0x19a   : > { %3615 = vmatprep.subr.bf16.mxu1 %v4124_v27 }
 0x19b   : > { %3594 = vmatpush3.bf16.msra.mxu0 %v4123_v28 }
 0x19c   : > { %3595 = vmatprep.subr.bf16.mxu0 %v4126_v29 }
 0x19d   : > { %3616 = vmatpush3.bf16.msra.mxu1 %v4125_v30 }
 0x19e   : > { %3617 = vmatprep.subr.bf16.mxu1 %v4128_v31  ;;  %v1884_v31 = vld [vmem:[%s5333_s6] sm:$0x7] }
 0x19f   : > { %3596 = vmatpush3.bf16.msra.mxu0 %v4127_v32  ;;  %v4831_v32 = vrot.slane %v1884_v31, %v4607_v23 }
 0x1a0   : > { %3597 = vmatprep.subr.bf16.mxu0 %v4130_v34 }
 0x1a1   : > { %3618 = vmatpush3.bf16.msra.mxu1 %v4129_v35 }
 0x1a2   : > { %3619 = vmatprep.subr.bf16.mxu1 %v4132_v36  ;;  %v4834_v36 = vrot.slane %v1884_v31, %v4601_v11 }
 0x1a3   : > { %3598 = vmatpush3.bf16.msra.mxu0 %v4131_v37 }
 0x1a4   : > { %2029 = vmatprep.subr.bf16.mxu0 %v4622_v38 }
 0x1a5   : > { %3620 = vmatpush3.bf16.msra.mxu1 %v4133_v39 }
 0x1a6   : > { %1803 = vmatmul.mubr.bf16.vlgmr.msra.gmra.mxu0 %v4613_v3  ;;  %3699 = vmatprep.subr.bf16.mxu1 %v4393_v45 }
 0x1a7   : > { %2030 = vmatpush1.bf16.msra.mxu0 %v4627_v40  ;;  %2061 = vmatprep.mubr.bf16.mxu0 %v4394_v46 }
 0x1a8   : > { %1844 = vmatmul.mubr.bf16.vlgmr.msra.gmra.mxu1 %v4615_v6  ;;  %2031 = vmatprep.subr.bf16.mxu0 %v4633_v41 }
 0x1a9   : > { %3700 = vmatpush3.bf16.msra.mxu1 %v4643_v43  ;;  %3715 = vmatprep.mubr.msk.bf16.mxu1 %vm4395_vm0, %v4393_v45 }
 0x1aa   : > { %3701 = vmatprep.subr.bf16.mxu1 %v4393_v45 }
 0x1ab   : > { %2032 = vmatpush1.bf16.msra.mxu0 %v4638_v42 }
 0x1ac   : > { %2033 = vmatprep.subr.bf16.mxu0 %v4649_v44 }
 0x1ad   : > { %3702 = vmatpush3.bf16.msra.mxu1 %v4657_v47 }
 0x1ae   : > { %3703 = vmatprep.subr.bf16.mxu1 %v4393_v45 }
 0x1af   : > { %2034 = vmatpush1.bf16.msra.mxu0 %v4664_v48 }
 0x1b0   : > { %2035 = vmatprep.subr.bf16.mxu0 %v4672_v49 }
 0x1b1   : > { %3704 = vmatpush3.bf16.msra.mxu1 %v4679_v50 }
 0x1b2   : > { %3705 = vmatprep.subr.bf16.mxu1 %v4393_v45 }
 0x1b3   : > { %2036 = vmatpush1.bf16.msra.mxu0 %v4685_v51 }
 0x1b4   : > { %2037 = vmatprep.subr.bf16.mxu0 %v4691_v52 }
 0x1b5   : > { %3706 = vmatpush3.bf16.msra.mxu1 %v4698_v53 }
 0x1b6   : > { %3707 = vmatprep.subr.bf16.mxu1 %v4393_v45 }
 0x1b7   : > { %2038 = vmatpush1.bf16.msra.mxu0 %v4704_v54 }
 0x1b8   : > { %2039 = vmatprep.subr.bf16.mxu0 %v4713_v55 }
 0x1b9   : > { %3708 = vmatpush3.bf16.msra.mxu1 %v4719_v56 }
 0x1ba   : > { %3709 = vmatprep.subr.bf16.mxu1 %v4393_v45 }
 0x1bb   : > { %2040 = vmatpush1.bf16.msra.mxu0 %v4726_v57 }
 0x1bc   : > { %2041 = vmatprep.subr.bf16.mxu0 %v4732_v58 }
 0x1bd   : > { %3710 = vmatpush3.bf16.msra.mxu1 %v4738_v59 }
 0x1be   : > { %3711 = vmatprep.subr.bf16.mxu1 %v4393_v45 }
 0x1bf   : > { %2042 = vmatpush1.bf16.msra.mxu0 %v4745_v60 }
 0x1c0   : > { %2043 = vmatprep.subr.bf16.mxu0 %v4751_v61 }
 0x1c1   : > { %3712 = vmatpush3.bf16.msra.mxu1 %v4757_v62 }
 0x1c2   : > { %3713 = vmatprep.subr.bf16.mxu1 %v4393_v45 }
 0x1c3   : > { %2044 = vmatpush1.bf16.msra.mxu0 %v4764_v63 }
 0x1c4   : > { %2132 = vmatprep.subr.bf16.mxu0 %v4622_v38 }
 0x1c5   : > { %3714 = vmatpush3.bf16.msra.mxu1 %v4771_v0 }
 0x1c6   : > { %2062 = vmatmul.mubr.bf16.vlgmr.msra.gmra.mxu0 %v4394_v46  ;;  %3719 = vmatprep.subr.bf16.mxu1 %v4393_v45 }
 0x1c7   : > { %2133 = vmatpush1.bf16.msra.mxu0 %v4627_v40  ;;  %2164 = vmatprep.mubr.bf16.mxu0 %v4394_v46 }
 0x1c8   : > { %3716 = vmatmul.mubr.bf16.vlgmr.msra.gmra.mxu1 %v4394_v46  ;;  %2134 = vmatprep.subr.bf16.mxu0 %v4633_v41 }
 0x1c9   : > { %3720 = vmatpush3.bf16.msra.mxu1 %v4643_v43  ;;  %3735 = vmatprep.mubr.msk.bf16.mxu1 %vm4395_vm0, %v4393_v45 }
 0x1ca   : > { %3721 = vmatprep.subr.bf16.mxu1 %v4393_v45 }
 0x1cb   : > { %2135 = vmatpush1.bf16.msra.mxu0 %v4638_v42 }
 0x1cc   : > { %2136 = vmatprep.subr.bf16.mxu0 %v4649_v44 }
 0x1cd   : > { %3722 = vmatpush3.bf16.msra.mxu1 %v4657_v47 }
 0x1ce   : > { %3723 = vmatprep.subr.bf16.mxu1 %v4393_v45 }
 0x1cf   : > { %2137 = vmatpush1.bf16.msra.mxu0 %v4664_v48 }
 0x1d0   : > { %2138 = vmatprep.subr.bf16.mxu0 %v4672_v49 }
 0x1d1   : > { %3724 = vmatpush3.bf16.msra.mxu1 %v4679_v50 }
 0x1d2   : > { %3725 = vmatprep.subr.bf16.mxu1 %v4393_v45 }
 0x1d3   : > { %2139 = vmatpush1.bf16.msra.mxu0 %v4685_v51 }
 0x1d4   : > { %2140 = vmatprep.subr.bf16.mxu0 %v4691_v52 }
 0x1d5   : > { %3726 = vmatpush3.bf16.msra.mxu1 %v4698_v53 }
 0x1d6   : > { %3727 = vmatprep.subr.bf16.mxu1 %v4393_v45 }
 0x1d7   : > { %2141 = vmatpush1.bf16.msra.mxu0 %v4704_v54 }
 0x1d8   : > { %2142 = vmatprep.subr.bf16.mxu0 %v4713_v55 }
 0x1d9   : > { %3728 = vmatpush3.bf16.msra.mxu1 %v4719_v56 }
 0x1da   : > { %3729 = vmatprep.subr.bf16.mxu1 %v4393_v45 }
 0x1db   : > { %2143 = vmatpush1.bf16.msra.mxu0 %v4726_v57 }
 0x1dc   : > { %2144 = vmatprep.subr.bf16.mxu0 %v4732_v58 }
 0x1dd   : > { %3730 = vmatpush3.bf16.msra.mxu1 %v4738_v59 }
 0x1de   : > { %3731 = vmatprep.subr.bf16.mxu1 %v4393_v45 }
 0x1df   : > { %2145 = vmatpush1.bf16.msra.mxu0 %v4745_v60 }
 0x1e0   : > { %2146 = vmatprep.subr.bf16.mxu0 %v4751_v61 }
 0x1e1   : > { %3732 = vmatpush3.bf16.msra.mxu1 %v4757_v62 }
 0x1e2   : > { %3733 = vmatprep.subr.bf16.mxu1 %v4393_v45 }
 0x1e3   : > { %2147 = vmatpush1.bf16.msra.mxu0 %v4764_v63 }
 0x1e4   : > { %2250 = vmatprep.subr.bf16.mxu0 %v4622_v38 }
 0x1e5   : > { %3734 = vmatpush3.bf16.msra.mxu1 %v4771_v0 }
 0x1e6   : > { %3739 = vmatprep.subr.bf16.mxu1 %v4393_v45 }
 0x246   : > { %v1718_v2 = vpop.f32.mrf.mxu0 }
 0x247   : > { %v1719_v34 = vadd.f32 %v1718_v2, %v1160_v5 }
 0x248   : > { %v1720_v3 = vpop.f32.mrf.mxu0  ;;  %v1761_v4 = vpop.f32.mrf.mxu1 }
 0x249   : > { %v4836_v37 = vadd.f32 %v1761_v4, %v1719_v34 }
 0x24a   : > { %v1722_v6 = vpop.f32.mrf.mxu0  ;;  %v1763_v7 = vpop.f32.mrf.mxu1 }
 0x24b   : > { %v1723_v9 = vadd.f32 %v1722_v6, %v1160_v5 }
 0x24c   : > { %v1724_v10 = vpop.f32.mrf.mxu0  ;;  %v1765_v12 = vpop.f32.mrf.mxu1 }
 0x24d   : > { %v1725_v13 = vadd.f32 %v1724_v10, %v1164_v8  ;;  %v4820_v14 = vadd.f32 %v1765_v12, %v1723_v9  ;;  %v1721_v9 = vadd.f32 %v1720_v3, %v1164_v8  ;;  %v4845_v3 = vrot.slane %v1884_v31, %v4609_v33 }
 0x24e   : > { %v1767_v15 = vpop.f32.mrf.mxu1 }
 0x24f   : > { %v4822_v16 = vadd.f32 %v1767_v15, %v1725_v13  ;;  %v4841_v5 = vadd.f32 %v1763_v7, %v1721_v9 }
 0x266   : > { %v3599_v17 = vpop.f32.mrf.mxu0 }
 0x268   : > { %v3600_v18 = vpop.f32.mrf.mxu0  ;;  %v3621_v19 = vpop.f32.mrf.mxu1 }
 0x269   : > { %v3601_v8 = vadd.f32 %v3600_v18, %v3599_v17 }
 0x26a   : > { %v3602_v20 = vpop.f32.mrf.mxu0  ;;  %v3622_v21 = vpop.f32.mrf.mxu1 }
 0x26b   : > { %v1805_v34 = vadd.f32 %v3601_v8, %v1168_v25 }
 0x26c   : > { %v3603_v22 = vpop.f32.mrf.mxu0  ;;  %v3624_v24 = vpop.f32.mrf.mxu1 }
 0x26d   : > { %v3604_v26 = vadd.f32 %v3603_v22, %v3602_v20 }
 0x26e   : > { %v3625_v27 = vpop.f32.mrf.mxu1 }
 0x26f   : > { %v1808_v28 = vadd.f32 %v3604_v26, %v1168_v25  ;;  %v3626_v29 = vadd.f32 %v3625_v27, %v3624_v24 }
 0x271   : > { %v4825_v30 = vadd.f32 %v3626_v29, %v1808_v28 }
 0x286   : > { %v2063_v35 = vpop.f32.mrf.mxu0 }
 0x287   : > { %v2064_v39 = vadd.f32 %v2063_v35, %v4831_v32  ;;  %v3623_v35 = vadd.f32 %v3622_v21, %v3621_v19 }
 0x288   : > { %v2065_v1 = vpop.f32.mrf.mxu0  ;;  %v2104_v6 = vpop.f32.mrf.mxu1 }
 0x289   : > { %v2110_v10 = vadd.f32 %v2064_v39, %v4836_v37  ;;  %v2066_v20 = vadd.f32 %v2065_v1, %v4834_v36  ;;  %v2105_v7 = vadd.f32 %v2104_v6, %v4845_v3  ;;  %v4848_v9 = vadd.f32 %v3623_v35, %v1805_v34 }
 0x28a   : > { %v2067_v12 = vpop.f32.mrf.mxu0  ;;  %v3717_v13 = vpop.f32.mrf.mxu1 }
 0x28b   : > { %v3530_v15 = vmul.f32 -1.442695, %v2110_v10  ;;  %v2117_v4 = vadd.f32 %v2066_v20, %v4841_v5 }
 0x28c   : > { %v2068_v22 = vpop.f32.mrf.mxu0  ;;  %v2107_v2 = vpop.f32.mrf.mxu1 }
 0x28d   : > { %4203 = vpow2.f32 %v3530_v15  ;;  %v3531_v26 = vmul.f32 -1.442695, %v2117_v4 }
 0x28e   : > { %v3718_v24 = vpop.f32.mrf.mxu1 }
 0x28f   : > { %4205 = vpow2.f32 %v3531_v26 }
 0x29a   : > { %v4204_v27 = vpop.eup %4203 }
 0x29b   : > { %v2114_v28 = vadd.f32 1.0, %v4204_v27 }
 0x29c   : > { %v4206_v29 = vpop.eup %4205 }
 0x29d   : > { %4207 = vrcp.f32 %v2114_v28  ;;  %v2121_v39 = vadd.f32 1.0, %v4206_v29 }
 0x29f   : > { %4209 = vrcp.f32 %v2121_v39 }
 0x2aa   : > { %v4208_v1 = vpop.eup %4207 }
 0x2ab   : > { %v2124_v10 = vmul.f32 %v4208_v1, %v2105_v7 }
 0x2ac   : > { %v4210_v13 = vpop.eup %4209 }
 0x2ad   : > { %v2125_v12 = vadd.f32 %v2124_v10, %v4848_v9  ;;  %v2127_v15 = vsub.f32 1.0, %v4210_v13  ;;  %v2129_v31 = vmul.f32 0.0, %v4210_v13 }
 0x2af   : > { %4211 = vtanh.f32 %v2125_v12 }
 0x2bc   : > { %v4212_v20 = vpop.eup %4211 }
 0x2bd   : > { %v2128_v33 = vmul.f32 %v4212_v20, %v2127_v15 }
 0x2bf   : > { %v4851_v17 = vadd.f32 %v2129_v31, %v2128_v33 }
 0x2c1   : > { %v2131_v18 = vpack.c.bf16 %v4851_v17, %v4851_v17 }
 0x2c3   : > { %2165 = vmatmul.mubr.bf16.vlgmr.msra.gmra.mxu0 %v2131_v18  ;;  %3736 = vmatmul.mubr.bf16.vlgmr.msra.gmra.mxu1 %v2131_v18 }
 0x2c4   : > { %2251 = vmatpush1.bf16.msra.mxu0 %v4627_v40  ;;  %3740 = vmatpush3.bf16.msra.mxu1 %v4643_v43 }
 0x2c5   : > { %2252 = vmatprep.subr.bf16.mxu0 %v4633_v41  ;;  %3741 = vmatprep.subr.bf16.mxu1 %v4393_v45 }
 0x2c6   : > { %2282 = vmatprep.mubr.bf16.mxu0 %v4394_v46  ;;  %3755 = vmatprep.mubr.msk.bf16.mxu1 %vm4395_vm0, %v4393_v45 }
 0x2c8   : > { %2253 = vmatpush1.bf16.msra.mxu0 %v4638_v42  ;;  %3742 = vmatpush3.bf16.msra.mxu1 %v4657_v47 }
 0x2c9   : > { %2254 = vmatprep.subr.bf16.mxu0 %v4649_v44  ;;  %3743 = vmatprep.subr.bf16.mxu1 %v4393_v45 }
 0x2cc   : > { %2255 = vmatpush1.bf16.msra.mxu0 %v4664_v48  ;;  %3744 = vmatpush3.bf16.msra.mxu1 %v4679_v50 }
 0x2cd   : > { %2256 = vmatprep.subr.bf16.mxu0 %v4672_v49  ;;  %3745 = vmatprep.subr.bf16.mxu1 %v4393_v45 }
 0x2d0   : > { %2257 = vmatpush1.bf16.msra.mxu0 %v4685_v51  ;;  %3746 = vmatpush3.bf16.msra.mxu1 %v4698_v53 }
 0x2d1   : > { %2258 = vmatprep.subr.bf16.mxu0 %v4691_v52  ;;  %3747 = vmatprep.subr.bf16.mxu1 %v4393_v45 }
 0x2d4   : > { %2259 = vmatpush1.bf16.msra.mxu0 %v4704_v54  ;;  %3748 = vmatpush3.bf16.msra.mxu1 %v4719_v56 }
 0x2d5   : > { %2260 = vmatprep.subr.bf16.mxu0 %v4713_v55  ;;  %3749 = vmatprep.subr.bf16.mxu1 %v4393_v45 }
 0x2d8   : > { %2261 = vmatpush1.bf16.msra.mxu0 %v4726_v57  ;;  %3750 = vmatpush3.bf16.msra.mxu1 %v4738_v59 }
 0x2d9   : > { %2262 = vmatprep.subr.bf16.mxu0 %v4732_v58  ;;  %3751 = vmatprep.subr.bf16.mxu1 %v4393_v45 }
 0x2dc   : > { %2263 = vmatpush1.bf16.msra.mxu0 %v4745_v60  ;;  %3752 = vmatpush3.bf16.msra.mxu1 %v4757_v62 }
 0x2dd   : > { %2264 = vmatprep.subr.bf16.mxu0 %v4751_v61  ;;  %3753 = vmatprep.subr.bf16.mxu1 %v4393_v45 }
 0x2e0   : > { %2265 = vmatpush1.bf16.msra.mxu0 %v4764_v63  ;;  %3754 = vmatpush3.bf16.msra.mxu1 %v4771_v0 }
 0x2e1   : > { %2368 = vmatprep.subr.bf16.mxu0 %v4622_v38  ;;  %3759 = vmatprep.subr.bf16.mxu1 %v4393_v45 }
 0x383   : > { %v2166_v19 = vpop.f32.mrf.mxu0  ;;  %v2207_v21 = vpop.f32.mrf.mxu1 }
 0x384   : > { %v2167_v25 = vadd.f32 %v2166_v19, %v4831_v32  ;;  %v2208_v12 = vadd.f32 %v2207_v21, %v4845_v3  ;;  %v2242_v19 = vrot.slane %v4851_v17, 6 }
 0x385   : > { %v2168_v6 = vpop.f32.mrf.mxu0  ;;  %v3737_v22 = vpop.f32.mrf.mxu1 }
 0x386   : > { %v2214_v2 = vrot.slane %v2167_v25, 6  ;;  %v2169_v24 = vadd.f32 %v2168_v6, %v4834_v36  ;;  %v2234_v15 = vrot.slane %v2208_v12, 6 }
 0x387   : > { %v2170_v4 = vpop.f32.mrf.mxu0  ;;  %v2210_v26 = vpop.f32.mrf.mxu1 }
 0x388   : > { %v2216_v27 = vadd.f32 %v2214_v2, %v4836_v37  ;;  %v2224_v34 = vrot.slane %v2169_v24, 6 }
 0x389   : > { %v2171_v28 = vpop.f32.mrf.mxu0  ;;  %v3738_v8 = vpop.f32.mrf.mxu1 }
 0x38a   : > { %v3532_v29 = vmul.f32 -1.442695, %v2216_v27  ;;  %v2226_v35 = vadd.f32 %v2224_v34, %v4841_v5 }
 0x38c   : > { %4213 = vpow2.f32 %v3532_v29  ;;  %v3533_v39 = vmul.f32 -1.442695, %v2226_v35 }
 0x38e   : > { %4215 = vpow2.f32 %v3533_v39 }
 0x399   : > { %v4214_v7 = vpop.eup %4213 }
 0x39a   : > { %v2220_v1 = vadd.f32 1.0, %v4214_v7 }
 0x39b   : > { %v4216_v10 = vpop.eup %4215 }
 0x39c   : > { %4217 = vrcp.f32 %v2220_v1  ;;  %v2230_v13 = vadd.f32 1.0, %v4216_v10 }
 0x39e   : > { %4219 = vrcp.f32 %v2230_v13 }
 0x3a9   : > { %v4218_v20 = vpop.eup %4217 }
 0x3aa   : > { %v2236_v33 = vmul.f32 %v4218_v20, %v2234_v15 }
 0x3ab   : > { %v4220_v18 = vpop.eup %4219 }
 0x3ac   : > { %v2237_v31 = vadd.f32 %v2236_v33, %v4848_v9  ;;  %v2239_v25 = vsub.f32 1.0, %v4220_v18  ;;  %v2244_v2 = vmul.f32 %v4220_v18, %v2242_v19 }
 0x3ae   : > { %4221 = vtanh.f32 %v2237_v31 }
 0x3bb   : > { %v4222_v6 = vpop.eup %4221 }
 0x3bc   : > { %v2240_v22 = vmul.f32 %v4222_v6, %v2239_v25 }
 0x3be   : > { %v4897_v24 = vadd.f32 %v2244_v2, %v2240_v22 }
 0x3c0   : > { %v2246_v21 = vpack.c.bf16 %v4897_v24, %v4897_v24 }
 0x3c2   : > { %v2248_v4 = vrot.slane %v2246_v21, 1 }
 0x3c4   : > { %2283 = vmatmul.mubr.bf16.vlgmr.msra.gmra.mxu0 %v2248_v4  ;;  %3756 = vmatmul.mubr.bf16.vlgmr.msra.gmra.mxu1 %v2248_v4 }
 0x3c5   : > { %2369 = vmatpush1.bf16.msra.mxu0 %v4627_v40  ;;  %3760 = vmatpush3.bf16.msra.mxu1 %v4643_v43 }
 0x3c6   : > { %2370 = vmatprep.subr.bf16.mxu0 %v4633_v41  ;;  %3761 = vmatprep.subr.bf16.mxu1 %v4393_v45 }
 0x3c7   : > { %2400 = vmatprep.mubr.bf16.mxu0 %v4394_v46  ;;  %3775 = vmatprep.mubr.msk.bf16.mxu1 %vm4395_vm0, %v4393_v45 }
 0x3c9   : > { %2371 = vmatpush1.bf16.msra.mxu0 %v4638_v42  ;;  %3762 = vmatpush3.bf16.msra.mxu1 %v4657_v47 }
 0x3ca   : > { %2372 = vmatprep.subr.bf16.mxu0 %v4649_v44  ;;  %3763 = vmatprep.subr.bf16.mxu1 %v4393_v45 }
 0x3cd   : > { %2373 = vmatpush1.bf16.msra.mxu0 %v4664_v48  ;;  %3764 = vmatpush3.bf16.msra.mxu1 %v4679_v50 }
 0x3ce   : > { %2374 = vmatprep.subr.bf16.mxu0 %v4672_v49  ;;  %3765 = vmatprep.subr.bf16.mxu1 %v4393_v45 }
 0x3d1   : > { %2375 = vmatpush1.bf16.msra.mxu0 %v4685_v51  ;;  %3766 = vmatpush3.bf16.msra.mxu1 %v4698_v53 }
 0x3d2   : > { %2376 = vmatprep.subr.bf16.mxu0 %v4691_v52  ;;  %3767 = vmatprep.subr.bf16.mxu1 %v4393_v45 }
 0x3d5   : > { %2377 = vmatpush1.bf16.msra.mxu0 %v4704_v54  ;;  %3768 = vmatpush3.bf16.msra.mxu1 %v4719_v56 }
 0x3d6   : > { %2378 = vmatprep.subr.bf16.mxu0 %v4713_v55  ;;  %3769 = vmatprep.subr.bf16.mxu1 %v4393_v45 }
 0x3d9   : > { %2379 = vmatpush1.bf16.msra.mxu0 %v4726_v57  ;;  %3770 = vmatpush3.bf16.msra.mxu1 %v4738_v59 }
 0x3da   : > { %2380 = vmatprep.subr.bf16.mxu0 %v4732_v58  ;;  %3771 = vmatprep.subr.bf16.mxu1 %v4393_v45 }
 0x3dd   : > { %2381 = vmatpush1.bf16.msra.mxu0 %v4745_v60  ;;  %3772 = vmatpush3.bf16.msra.mxu1 %v4757_v62 }
 0x3de   : > { %2382 = vmatprep.subr.bf16.mxu0 %v4751_v61  ;;  %3773 = vmatprep.subr.bf16.mxu1 %v4393_v45 }
 0x3e1   : > { %2383 = vmatpush1.bf16.msra.mxu0 %v4764_v63  ;;  %3774 = vmatpush3.bf16.msra.mxu1 %v4771_v0 }
 0x3e2   : > { %2486 = vmatprep.subr.bf16.mxu0 %v4622_v38  ;;  %3779 = vmatprep.subr.bf16.mxu1 %v4393_v45 }
 0x484   : > { %v2284_v17 = vpop.f32.mrf.mxu0  ;;  %v2325_v26 = vpop.f32.mrf.mxu1 }
 0x485   : > { %v2285_v27 = vadd.f32 %v2284_v17, %v4831_v32  ;;  %v2326_v19 = vadd.f32 %v2325_v26, %v4845_v3  ;;  %v2360_v17 = vrot.slane %v4897_v24, 6 }
 0x486   : > { %v2286_v28 = vpop.f32.mrf.mxu0  ;;  %v3757_v8 = vpop.f32.mrf.mxu1 }
 0x487   : > { %v2332_v29 = vrot.slane %v2285_v27, 4  ;;  %v2287_v34 = vadd.f32 %v2286_v28, %v4834_v36  ;;  %v2352_v6 = vrot.slane %v2326_v19, 4 }
 0x488   : > { %v2288_v35 = vpop.f32.mrf.mxu0  ;;  %v2328_v39 = vpop.f32.mrf.mxu1 }
 0x489   : > { %v2334_v7 = vadd.f32 %v2332_v29, %v4836_v37  ;;  %v2342_v13 = vrot.slane %v2287_v34, 4 }
 0x48a   : > { %v2289_v1 = vpop.f32.mrf.mxu0  ;;  %v3758_v10 = vpop.f32.mrf.mxu1 }
 0x48b   : > { %v3534_v12 = vmul.f32 -1.442695, %v2334_v7  ;;  %v2344_v15 = vadd.f32 %v2342_v13, %v4841_v5 }
 0x48d   : > { %4223 = vpow2.f32 %v3534_v12  ;;  %v3535_v20 = vmul.f32 -1.442695, %v2344_v15 }
 0x48f   : > { %4225 = vpow2.f32 %v3535_v20 }
 0x49a   : > { %v4224_v33 = vpop.eup %4223 }
 0x49b   : > { %v2338_v31 = vadd.f32 1.0, %v4224_v33 }
 0x49c   : > { %v4226_v18 = vpop.eup %4225 }
 0x49d   : > { %4227 = vrcp.f32 %v2338_v31  ;;  %v2348_v25 = vadd.f32 1.0, %v4226_v18 }
 0x49f   : > { %4229 = vrcp.f32 %v2348_v25 }
 0x4aa   : > { %v4228_v22 = vpop.eup %4227 }
 0x4ab   : > { %v2354_v2 = vmul.f32 %v4228_v22, %v2352_v6 }
 0x4ac   : > { %v4230_v4 = vpop.eup %4229 }
 0x4ad   : > { %v2355_v21 = vadd.f32 %v2354_v2, %v4848_v9  ;;  %v2357_v27 = vsub.f32 1.0, %v4230_v4  ;;  %v2362_v29 = vmul.f32 %v4230_v4, %v2360_v17 }
 0x4af   : > { %4231 = vtanh.f32 %v2355_v21 }
 0x4bc   : > { %v4232_v28 = vpop.eup %4231 }
 0x4bd   : > { %v2358_v8 = vmul.f32 %v4232_v28, %v2357_v27 }
 0x4bf   : > { %v4943_v34 = vadd.f32 %v2362_v29, %v2358_v8 }
 0x4c1   : > { %v2364_v26 = vpack.c.bf16 %v4943_v34, %v4943_v34 }
 0x4c3   : > { %v2366_v35 = vrot.slane %v2364_v26, 2 }
 0x4c5   : > { %2401 = vmatmul.mubr.bf16.vlgmr.msra.gmra.mxu0 %v2366_v35  ;;  %3776 = vmatmul.mubr.bf16.vlgmr.msra.gmra.mxu1 %v2366_v35  ;;  %v2478_v35 = vrot.slane %v4943_v34, 6 }
 0x4c6   : > { %2487 = vmatpush1.bf16.msra.mxu0 %v4627_v40  ;;  %3780 = vmatpush3.bf16.msra.mxu1 %v4643_v43 }
 0x4c7   : > { %2488 = vmatprep.subr.bf16.mxu0 %v4633_v41  ;;  %3781 = vmatprep.subr.bf16.mxu1 %v4393_v45 }
 0x4c8   : > { %2518 = vmatprep.mubr.bf16.mxu0 %v4394_v46  ;;  %3795 = vmatprep.mubr.msk.bf16.mxu1 %vm4395_vm0, %v4393_v45 }
 0x4ca   : > { %2489 = vmatpush1.bf16.msra.mxu0 %v4638_v42  ;;  %3782 = vmatpush3.bf16.msra.mxu1 %v4657_v47 }
 0x4cb   : > { %2490 = vmatprep.subr.bf16.mxu0 %v4649_v44  ;;  %3783 = vmatprep.subr.bf16.mxu1 %v4393_v45 }
 0x4ce   : > { %2491 = vmatpush1.bf16.msra.mxu0 %v4664_v48  ;;  %3784 = vmatpush3.bf16.msra.mxu1 %v4679_v50 }
 0x4cf   : > { %2492 = vmatprep.subr.bf16.mxu0 %v4672_v49  ;;  %3785 = vmatprep.subr.bf16.mxu1 %v4393_v45 }
 0x4d2   : > { %2493 = vmatpush1.bf16.msra.mxu0 %v4685_v51  ;;  %3786 = vmatpush3.bf16.msra.mxu1 %v4698_v53 }
 0x4d3   : > { %2494 = vmatprep.subr.bf16.mxu0 %v4691_v52  ;;  %3787 = vmatprep.subr.bf16.mxu1 %v4393_v45 }
 0x4d6   : > { %2495 = vmatpush1.bf16.msra.mxu0 %v4704_v54  ;;  %3788 = vmatpush3.bf16.msra.mxu1 %v4719_v56 }
 0x4d7   : > { %2496 = vmatprep.subr.bf16.mxu0 %v4713_v55  ;;  %3789 = vmatprep.subr.bf16.mxu1 %v4393_v45 }
 0x4da   : > { %2497 = vmatpush1.bf16.msra.mxu0 %v4726_v57  ;;  %3790 = vmatpush3.bf16.msra.mxu1 %v4738_v59 }
 0x4db   : > { %2498 = vmatprep.subr.bf16.mxu0 %v4732_v58  ;;  %3791 = vmatprep.subr.bf16.mxu1 %v4393_v45 }
 0x4de   : > { %2499 = vmatpush1.bf16.msra.mxu0 %v4745_v60  ;;  %3792 = vmatpush3.bf16.msra.mxu1 %v4757_v62 }
 0x4df   : > { %2500 = vmatprep.subr.bf16.mxu0 %v4751_v61  ;;  %3793 = vmatprep.subr.bf16.mxu1 %v4393_v45 }
 0x4e2   : > { %2501 = vmatpush1.bf16.msra.mxu0 %v4764_v63  ;;  %3794 = vmatpush3.bf16.msra.mxu1 %v4771_v0 }
 0x4e3   : > { %2592 = vmatprep.subr.bf16.mxu0 %v4622_v38  ;;  %3799 = vmatprep.subr.bf16.mxu1 %v4393_v45 }
 0x585   : > { %v2402_v24 = vpop.f32.mrf.mxu0  ;;  %v2443_v39 = vpop.f32.mrf.mxu1 }
 0x586   : > { %v2403_v7 = vadd.f32 %v2402_v24, %v4831_v32  ;;  %v2444_v17 = vadd.f32 %v2443_v39, %v4845_v3 }
 0x587   : > { %v2404_v1 = vpop.f32.mrf.mxu0  ;;  %v3777_v10 = vpop.f32.mrf.mxu1 }
 0x588   : > { %v2450_v12 = vrot.slane %v2403_v7, 2  ;;  %v2405_v13 = vadd.f32 %v2404_v1, %v4834_v36  ;;  %v2470_v28 = vrot.slane %v2444_v17, 2 }
 0x589   : > { %v2406_v15 = vpop.f32.mrf.mxu0  ;;  %v2446_v20 = vpop.f32.mrf.mxu1 }
 0x58a   : > { %v2452_v33 = vadd.f32 %v2450_v12, %v4836_v37  ;;  %v2460_v25 = vrot.slane %v2405_v13, 2 }
 0x58b   : > { %v2407_v31 = vpop.f32.mrf.mxu0  ;;  %v3778_v18 = vpop.f32.mrf.mxu1 }
 0x58c   : > { %v3536_v19 = vmul.f32 -1.442695, %v2452_v33  ;;  %v2462_v6 = vadd.f32 %v2460_v25, %v4841_v5 }
 0x58e   : > { %4233 = vpow2.f32 %v3536_v19  ;;  %v3537_v22 = vmul.f32 -1.442695, %v2462_v6 }
 0x590   : > { %4235 = vpow2.f32 %v3537_v22 }
 0x59b   : > { %v4234_v2 = vpop.eup %4233 }
 0x59c   : > { %v2456_v21 = vadd.f32 1.0, %v4234_v2 }
 0x59d   : > { %v4236_v4 = vpop.eup %4235 }
 0x59e   : > { %4237 = vrcp.f32 %v2456_v21  ;;  %v2466_v27 = vadd.f32 1.0, %v4236_v4 }
 0x5a0   : > { %4239 = vrcp.f32 %v2466_v27 }
 0x5ab   : > { %v4238_v8 = vpop.eup %4237 }
 0x5ac   : > { %v2472_v29 = vmul.f32 %v4238_v8, %v2470_v28 }
 0x5ad   : > { %v4240_v26 = vpop.eup %4239 }
 0x5ae   : > { %v2473_v37 = vadd.f32 %v2472_v29, %v4848_v9  ;;  %v2475_v5 = vsub.f32 1.0, %v4240_v26  ;;  %v2480_v1 = vmul.f32 %v4240_v26, %v2478_v35 }
 0x5b0   : > { %4241 = vtanh.f32 %v2473_v37 }
 0x5bd   : > { %v4242_v24 = vpop.eup %4241 }
 0x5be   : > { %v2476_v7 = vmul.f32 %v4242_v24, %v2475_v5 }
 0x5c0   : > { %v4989_v10 = vadd.f32 %v2480_v1, %v2476_v7  ;;  %v5042_v7 = vld [vmem:[%s5332_s5 + $0xa8] ss:$12 sps:$4 sm:$0xff]  }
 0x5c1   : > { %v5049_v1 = vld [vmem:[%s5332_s5 + $0x94] ss:$12 sps:$4 sm:$0xff]  }
 0x5c2   : > { %v2482_v39 = vpack.c.bf16 %v4989_v10, %v4989_v10  ;;  %v2587_v8 = vrot.slane %v4989_v10, 6  ;;  %v5059_v10 = vld [vmem:[%s5332_s5 + $0x90] ss:$12 sps:$4 sm:$0xff]  }
 0x5c4   : > { %v2484_v12 = vrot.slane %v2482_v39, 3 }
 0x5c6   : > { %2519 = vmatmul.mubr.bf16.vlgmr.msra.gmra.mxu0 %v2484_v12  ;;  %3796 = vmatmul.mubr.bf16.vlgmr.msra.gmra.mxu1 %v2484_v12 }
 0x5c7   : > { %2593 = vmatpush1.bf16.msra.mxu0 %v4627_v40  ;;  %3800 = vmatpush3.bf16.msra.mxu1 %v4643_v43 }
 0x5c8   : > { %2594 = vmatprep.subr.bf16.mxu0 %v4633_v41  ;;  %3801 = vmatprep.subr.bf16.mxu1 %v4393_v45 }
 0x5c9   : > { %2624 = vmatprep.mubr.bf16.mxu0 %v4394_v46  ;;  %3815 = vmatprep.mubr.msk.bf16.mxu1 %vm4395_vm0, %v4393_v45 }
 0x5cb   : > { %2595 = vmatpush1.bf16.msra.mxu0 %v4638_v42  ;;  %3802 = vmatpush3.bf16.msra.mxu1 %v4657_v47 }
 0x5cc   : > { %2596 = vmatprep.subr.bf16.mxu0 %v4649_v44  ;;  %3803 = vmatprep.subr.bf16.mxu1 %v4393_v45 }
 0x5cf   : > { %2597 = vmatpush1.bf16.msra.mxu0 %v4664_v48  ;;  %3804 = vmatpush3.bf16.msra.mxu1 %v4679_v50 }
 0x5d0   : > { %2598 = vmatprep.subr.bf16.mxu0 %v4672_v49  ;;  %3805 = vmatprep.subr.bf16.mxu1 %v4393_v45 }
 0x5d3   : > { %2599 = vmatpush1.bf16.msra.mxu0 %v4685_v51  ;;  %3806 = vmatpush3.bf16.msra.mxu1 %v4698_v53 }
 0x5d4   : > { %2600 = vmatprep.subr.bf16.mxu0 %v4691_v52  ;;  %3807 = vmatprep.subr.bf16.mxu1 %v4393_v45 }
 0x5d7   : > { %2601 = vmatpush1.bf16.msra.mxu0 %v4704_v54  ;;  %3808 = vmatpush3.bf16.msra.mxu1 %v4719_v56 }
 0x5d8   : > { %2602 = vmatprep.subr.bf16.mxu0 %v4713_v55  ;;  %3809 = vmatprep.subr.bf16.mxu1 %v4393_v45 }
 0x5db   : > { %2603 = vmatpush1.bf16.msra.mxu0 %v4726_v57  ;;  %3810 = vmatpush3.bf16.msra.mxu1 %v4738_v59 }
 0x5dc   : > { %2604 = vmatprep.subr.bf16.mxu0 %v4732_v58  ;;  %3811 = vmatprep.subr.bf16.mxu1 %v4393_v45 }
 0x5df   : > { %2605 = vmatpush1.bf16.msra.mxu0 %v4745_v60  ;;  %3812 = vmatpush3.bf16.msra.mxu1 %v4757_v62 }
 0x5e0   : > { %2606 = vmatprep.subr.bf16.mxu0 %v4751_v61  ;;  %3813 = vmatprep.subr.bf16.mxu1 %v4393_v45 }
 0x5e3   : > { %2607 = vmatpush1.bf16.msra.mxu0 %v4764_v63  ;;  %3814 = vmatpush3.bf16.msra.mxu1 %v4771_v0 }
 0x5e4   : > { %2710 = vmatprep.subr.bf16.mxu0 %v4622_v38  ;;  %3819 = vmatprep.subr.bf16.mxu1 %v4393_v45 }
 0x686   : > { %v2520_v40 = vpop.f32.mrf.mxu0  ;;  %v2561_v41 = vpop.f32.mrf.mxu1 }
 0x687   : > { %v2521_v42 = vadd.f32 %v2520_v40, %v4831_v32  ;;  %v2562_v21 = vadd.f32 %v2561_v41, %v4845_v3 }
 0x688   : > { %v2522_v44 = vpop.f32.mrf.mxu0  ;;  %v3797_v9 = vpop.f32.mrf.mxu1 }
 0x689   : > { %v2567_v34 = vadd.f32 %v2521_v42, %v4820_v14  ;;  %v2523_v33 = vadd.f32 %v2522_v44, %v4834_v36 }
 0x68a   : > { %v2524_v13 = vpop.f32.mrf.mxu0  ;;  %v2564_v15 = vpop.f32.mrf.mxu1 }
 0x68b   : > { %v3538_v20 = vmul.f32 -1.442695, %v2567_v34  ;;  %v2574_v38 = vadd.f32 %v2523_v33, %v4822_v16 }
 0x68c   : > { %v2525_v31 = vpop.f32.mrf.mxu0  ;;  %v3798_v18 = vpop.f32.mrf.mxu1 }
 0x68d   : > { %4243 = vpow2.f32 %v3538_v20  ;;  %v3539_v19 = vmul.f32 -1.442695, %v2574_v38 }
 0x68f   : > { %4245 = vpow2.f32 %v3539_v19 }
 0x69a   : > { %v4244_v25 = vpop.eup %4243 }
 0x69b   : > { %v2571_v6 = vadd.f32 1.0, %v4244_v25 }
 0x69c   : > { %v4246_v22 = vpop.eup %4245 }
 0x69d   : > { %4247 = vrcp.f32 %v2571_v6  ;;  %v2578_v2 = vadd.f32 1.0, %v4246_v22  ;;  %v4288_v6 = vld [vmem:[%s5332_s5 + $0xb0] ss:$12 sps:$4 sm:$0xff]   ;;  %v4289_v22 = vld [vmem:[%s5332_s5 + $0x98] ss:$12 sps:$4 sm:$0xff]  }
 0x69f   : > { %4249 = vrcp.f32 %v2578_v2  ;;  %v4290_v2 = vld [vmem:[%s5332_s5 + $0x78] ss:$12 sps:$4 sm:$0xff]  }
 0x6aa   : > { %v4248_v4 = vpop.eup %4247 }
 0x6ab   : > { %v2581_v17 = vmul.f32 %v4248_v4, %v2562_v21  ;;  %v4291_v21 = vld [vmem:[%s5332_s5 + $0x80] ss:$12 sps:$4 sm:$0xff]   ;;  %v4292_v4 = vld [vmem:[%s5332_s5 + $0x64] ss:$12 sps:$4 sm:$0xff]  }
 0x6ac   : > { %v4250_v28 = vpop.eup %4249 }
 0x6ad   : > { %v2582_v27 = vadd.f32 %v2581_v17, %v4825_v30  ;;  %v2584_v29 = vsub.f32 1.0, %v4250_v28  ;;  %v2589_v35 = vmul.f32 %v4250_v28, %v2587_v8  ;;  %v4293_v17 = vld [vmem:[%s5332_s5 + $0x60] ss:$12 sps:$4 sm:$0xff]   ;;  %v4296_v8 = vld [vmem:[%s5332_s5 + $0x48] ss:$12 sps:$4 sm:$0xff]  }
 0x6ae   : > { %v4295_v28 = vld [vmem:[%s5332_s5 + $0x4c] ss:$12 sps:$4 sm:$0xff]  }
 0x6af   : > { %4251 = vtanh.f32 %v2582_v27  ;;  %v4294_v27 = vld [vmem:[%s5332_s5 + $0x68] ss:$12 sps:$4 sm:$0xff]  }
 0x6bc   : > { %v4252_v37 = vpop.eup %4251 }
 0x6bd   : > { %v2585_v26 = vmul.f32 %v4252_v37, %v2584_v29  ;;  %v4297_v29 = vld [vmem:[%s5332_s5 + $0x50] ss:$12 sps:$4 sm:$0xff]   ;;  %v4298_v37 = vld [vmem:[%s5332_s5 + $0x34] ss:$12 sps:$4 sm:$0xff]  }
 0x6bf   : > { %v5035_v5 = vadd.f32 %v2589_v35, %v2585_v26  ;;  %v4299_v26 = vld [vmem:[%s5332_s5 + $0x30] ss:$12 sps:$4 sm:$0xff]   ;;  %v4300_v35 = vld [vmem:[%s5332_s5 + $0x38] ss:$12 sps:$4 sm:$0xff]  }
 0x6c1   : > { %v2591_v24 = vpack.c.bf16 %v5035_v5, %v5035_v5  ;;  %v2702_v15 = vrot.slane %v5035_v5, 6  ;;  %v4301_v5 = vld [vmem:[%s5332_s5 + $0x1c] ss:$12 sps:$4 sm:$0xff]  }
 0x6c3   : > { %2625 = vmatmul.mubr.bf16.vlgmr.msra.gmra.mxu0 %v2591_v24  ;;  %3816 = vmatmul.mubr.bf16.vlgmr.msra.gmra.mxu1 %v2591_v24  ;;  %v4302_v24 = vld [vmem:[%s5332_s5 + $0x18] ss:$12 sps:$4 sm:$0xff]  }
 0x6c4   : > { %2711 = vmatpush1.bf16.msra.mxu0 %v5042_v7  ;;  %3820 = vmatpush3.bf16.msra.mxu1 %v4643_v43  ;;  %v5066_v43 = vld [vmem:[%s5332_s5 + $0x7c] ss:$12 sps:$4 sm:$0xff]  }
 0x6c5   : > { %2712 = vmatprep.subr.bf16.mxu0 %v5049_v1  ;;  %3821 = vmatprep.subr.bf16.mxu1 %v4393_v45 }
 0x6c6   : > { %2742 = vmatprep.mubr.bf16.mxu0 %v4394_v46  ;;  %3835 = vmatprep.mubr.msk.bf16.mxu1 %vm4395_vm0, %v4393_v45 }
 0x6c8   : > { %2713 = vmatpush1.bf16.msra.mxu0 %v5059_v10  ;;  %3822 = vmatpush3.bf16.msra.mxu1 %v4657_v47  ;;  %v4287_v47 = vld [vmem:[%s5332_s5 + $0xac] ss:$12 sps:$4 sm:$0xff]  }
 0x6c9   : > { %2714 = vmatprep.subr.bf16.mxu0 %v5066_v43  ;;  %3823 = vmatprep.subr.bf16.mxu1 %v4393_v45 }
 0x6cc   : > { %2715 = vmatpush1.bf16.msra.mxu0 %v4664_v48  ;;  %3824 = vmatpush3.bf16.msra.mxu1 %v4679_v50 }
 0x6cd   : > { %2716 = vmatprep.subr.bf16.mxu0 %v4672_v49  ;;  %3825 = vmatprep.subr.bf16.mxu1 %v4393_v45 }
 0x6d0   : > { %2717 = vmatpush1.bf16.msra.mxu0 %v4685_v51  ;;  %3826 = vmatpush3.bf16.msra.mxu1 %v4698_v53 }
 0x6d1   : > { %2718 = vmatprep.subr.bf16.mxu0 %v4691_v52  ;;  %3827 = vmatprep.subr.bf16.mxu1 %v4393_v45 }
 0x6d4   : > { %2719 = vmatpush1.bf16.msra.mxu0 %v4704_v54  ;;  %3828 = vmatpush3.bf16.msra.mxu1 %v4719_v56 }
 0x6d5   : > { %2720 = vmatprep.subr.bf16.mxu0 %v4713_v55  ;;  %3829 = vmatprep.subr.bf16.mxu1 %v4393_v45 }
 0x6d8   : > { %2721 = vmatpush1.bf16.msra.mxu0 %v4726_v57  ;;  %3830 = vmatpush3.bf16.msra.mxu1 %v4738_v59 }
 0x6d9   : > { %2722 = vmatprep.subr.bf16.mxu0 %v4732_v58  ;;  %3831 = vmatprep.subr.bf16.mxu1 %v4393_v45 }
 0x6dc   : > { %2723 = vmatpush1.bf16.msra.mxu0 %v4745_v60  ;;  %3832 = vmatpush3.bf16.msra.mxu1 %v4757_v62 }
 0x6dd   : > { %2724 = vmatprep.subr.bf16.mxu0 %v4751_v61  ;;  %3833 = vmatprep.subr.bf16.mxu1 %v4393_v45 }
 0x6e0   : > { %2725 = vmatpush1.bf16.msra.mxu0 %v4764_v63  ;;  %3834 = vmatpush3.bf16.msra.mxu1 %v4771_v0 }
 0x6e1   : > { %2828 = vmatprep.subr.bf16.mxu0 %v4287_v47  ;;  %3839 = vmatprep.subr.bf16.mxu1 %v4393_v45 }
 0x783   : > { %v2626_v48 = vpop.f32.mrf.mxu0  ;;  %v2667_v49 = vpop.f32.mrf.mxu1 }
 0x784   : > { %v2627_v50 = vadd.f32 %v2626_v48, %v4831_v32  ;;  %v2668_v40 = vadd.f32 %v2667_v49, %v4845_v3 }
 0x785   : > { %v2628_v51 = vpop.f32.mrf.mxu0  ;;  %v3817_v52 = vpop.f32.mrf.mxu1 }
 0x786   : > { %v2674_v53 = vrot.slane %v2627_v50, 6  ;;  %v2629_v54 = vadd.f32 %v2628_v51, %v4834_v36  ;;  %v2694_v42 = vrot.slane %v2668_v40, 6 }
 0x787   : > { %v2630_v55 = vpop.f32.mrf.mxu0  ;;  %v2670_v56 = vpop.f32.mrf.mxu1 }
 0x788   : > { %v2676_v57 = vadd.f32 %v2674_v53, %v4820_v14  ;;  %v2684_v61 = vrot.slane %v2629_v54, 6 }
 0x789   : > { %v2631_v58 = vpop.f32.mrf.mxu0  ;;  %v3818_v59 = vpop.f32.mrf.mxu1 }
 0x78a   : > { %v3540_v60 = vmul.f32 -1.442695, %v2676_v57  ;;  %v2686_v62 = vadd.f32 %v2684_v61, %v4822_v16 }
 0x78c   : > { %4253 = vpow2.f32 %v3540_v60  ;;  %v3541_v63 = vmul.f32 -1.442695, %v2686_v62 }
 0x78e   : > { %4255 = vpow2.f32 %v3541_v63 }
 0x799   : > { %v4254_v0 = vpop.eup %4253 }
 0x79a   : > { %v2680_v39 = vadd.f32 1.0, %v4254_v0 }
 0x79b   : > { %v4256_v12 = vpop.eup %4255 }
 0x79c   : > { %4257 = vrcp.f32 %v2680_v39  ;;  %v2690_v41 = vadd.f32 1.0, %v4256_v12 }
 0x79e   : > { %4259 = vrcp.f32 %v2690_v41 }
 0x7a9   : > { %v4258_v44 = vpop.eup %4257 }
 0x7aa   : > { %v2696_v9 = vmul.f32 %v4258_v44, %v2694_v42 }
 0x7ab   : > { %v4260_v13 = vpop.eup %4259 }
 0x7ac   : > { %v2697_v34 = vadd.f32 %v2696_v9, %v4825_v30  ;;  %v2699_v20 = vsub.f32 1.0, %v4260_v13  ;;  %v2704_v18 = vmul.f32 %v4260_v13, %v2702_v15 }
 0x7ae   : > { %4261 = vtanh.f32 %v2697_v34 }
 0x7bb   : > { %v4262_v33 = vpop.eup %4261 }
 0x7bc   : > { %v2700_v31 = vmul.f32 %v4262_v33, %v2699_v20 }
 0x7be   : > { %v5103_v38 = vadd.f32 %v2704_v18, %v2700_v31 }
 0x7c0   : > { %v2706_v19 = vpack.c.bf16 %v5103_v38, %v5103_v38  ;;  %v2820_v34 = vrot.slane %v5103_v38, 6  ;;  %v4166_v38 = vld [vmem:[%s5334_s7 + $0x70] ss:$8 sps:$4 sm:$0xff]  }
 0x7c2   : > { %v2708_v25 = vrot.slane %v2706_v19, 1 }
 0x7c4   : > { %2743 = vmatmul.mubr.bf16.vlgmr.msra.gmra.mxu0 %v2708_v25  ;;  %3836 = vmatmul.mubr.bf16.vlgmr.msra.gmra.mxu1 %v2708_v25  ;;  %v4168_v25 = vld [vmem:[%s5334_s7 + $0x74] ss:$8 sps:$4 sm:$0xff]  }
 0x7c5   : > { %2829 = vmatpush1.bf16.msra.mxu0 %v5042_v7  ;;  %3840 = vmatpush3.bf16.msra.mxu1 %v4288_v6  ;;  %v4303_v7 = vld [vmem:[%s5332_s5 + $0x20] ss:$12 sps:$4 sm:$0xff]  }
 0x7c6   : > { %2830 = vmatprep.subr.bf16.mxu0 %v5049_v1  ;;  %3841 = vmatprep.subr.bf16.mxu1 %v4393_v45  ;;  %v4304_v1 = vld [vmem:[%s5332_s5 + $0x4] ss:$12 sps:$4 sm:$0xff]  }
 0x7c7   : > { %2860 = vmatprep.mubr.bf16.mxu0 %v4394_v46  ;;  %3855 = vmatprep.mubr.msk.bf16.mxu1 %vm4395_vm0, %v4393_v45  ;;  %v4171_v6 = vld [vmem:[%s5334_s7 + $0x64] ss:$8 sps:$4 sm:$0xff]  }
 0x7c9   : > { %2831 = vmatpush1.bf16.msra.mxu0 %v5059_v10  ;;  %3842 = vmatpush3.bf16.msra.mxu1 %v4289_v22  ;;  %v4305_v10 = vld [vmem:[%s5332_s5] ss:$12 sps:$4 sm:$0xff]  }
 0x7ca   : > { %2832 = vmatprep.subr.bf16.mxu0 %v5066_v43  ;;  %3843 = vmatprep.subr.bf16.mxu1 %v4393_v45  ;;  %v4306_v43 = vld [vmem:[%s5332_s5 + $0x8] ss:$12 sps:$4 sm:$0xff]  }
 0x7cb   : > { %v4169_v22 = vld [vmem:[%s5334_s7 + $0x60] ss:$8 sps:$4 sm:$0xff]  }
 0x7cd   : > { %2833 = vmatpush1.bf16.msra.mxu0 %v4290_v2  ;;  %3844 = vmatpush3.bf16.msra.mxu1 %v4291_v21  ;;  %v4174_v2 = vld [vmem:[%s5334_s7 + $0x54] ss:$8 sps:$4 sm:$0xff]   ;;  %v4172_v21 = vld [vmem:[%s5334_s7 + $0x50] ss:$8 sps:$4 sm:$0xff]  }
 0x7ce   : > { %2834 = vmatprep.subr.bf16.mxu0 %v4292_v4  ;;  %3845 = vmatprep.subr.bf16.mxu1 %v4393_v45  ;;  %v4175_v4 = vld [vmem:[%s5334_s7 + $0x40] ss:$8 sps:$4 sm:$0xff]  }
 0x7d1   : > { %2835 = vmatpush1.bf16.msra.mxu0 %v4293_v17  ;;  %3846 = vmatpush3.bf16.msra.mxu1 %v4294_v27  ;;  %v4177_v17 = vld [vmem:[%s5334_s7 + $0x44] ss:$8 sps:$4 sm:$0xff]   ;;  %v4180_v27 = vld [vmem:[%s5334_s7 + $0x34] ss:$8 sps:$4 sm:$0xff]  }
 0x7d2   : > { %2836 = vmatprep.subr.bf16.mxu0 %v4295_v28  ;;  %3847 = vmatprep.subr.bf16.mxu1 %v4393_v45  ;;  %v4178_v28 = vld [vmem:[%s5334_s7 + $0x30] ss:$8 sps:$4 sm:$0xff]  }
 0x7d5   : > { %2837 = vmatpush1.bf16.msra.mxu0 %v4296_v8  ;;  %3848 = vmatpush3.bf16.msra.mxu1 %v4297_v29  ;;  %v4183_v8 = vld [vmem:[%s5334_s7 + $0x24] ss:$8 sps:$4 sm:$0xff]   ;;  %v4181_v29 = vld [vmem:[%s5334_s7 + $0x20] ss:$8 sps:$4 sm:$0xff]  }
 0x7d6   : > { %2838 = vmatprep.subr.bf16.mxu0 %v4298_v37  ;;  %3849 = vmatprep.subr.bf16.mxu1 %v4393_v45  ;;  %v4186_v37 = vld [vmem:[%s5334_s7 + $0x14] ss:$8 sps:$4 sm:$0xff]  }
 0x7d9   : > { %2839 = vmatpush1.bf16.msra.mxu0 %v4299_v26  ;;  %3850 = vmatpush3.bf16.msra.mxu1 %v4300_v35  ;;  %v4184_v26 = vld [vmem:[%s5334_s7 + $0x10] ss:$8 sps:$4 sm:$0xff]   ;;  %v4189_v35 = vld [vmem:[%s5334_s7 + $0x4] ss:$8 sps:$4 sm:$0xff]  }
 0x7da   : > { %2840 = vmatprep.subr.bf16.mxu0 %v4301_v5  ;;  %3851 = vmatprep.subr.bf16.mxu1 %v4393_v45  ;;  %v4187_v5 = vld [vmem:[%s5334_s7] ss:$8 sps:$4 sm:$0xff]  }
 0x7dd   : > { %2841 = vmatpush1.bf16.msra.mxu0 %v4302_v24  ;;  %3852 = vmatpush3.bf16.msra.mxu1 %v4303_v7  ;;  %v4190_v24 = vld [vmem:[%s5336_s9 + $0x38] sm:$0xff]   ;;  %v4191_v7 = vld [vmem:[%s5336_s9 + $0x30] sm:$0xff]  }
 0x7de   : > { %2842 = vmatprep.subr.bf16.mxu0 %v4304_v1  ;;  %3853 = vmatprep.subr.bf16.mxu1 %v4393_v45  ;;  %v4192_v1 = vld [vmem:[%s5336_s9 + $0x28] sm:$0xff]  }
 0x7e1   : > { %2843 = vmatpush1.bf16.msra.mxu0 %v4305_v10  ;;  %3854 = vmatpush3.bf16.msra.mxu1 %v4306_v43  ;;  %v4193_v10 = vld [vmem:[%s5336_s9 + $0x20] sm:$0xff]   ;;  %v4194_v43 = vld [vmem:[%s5336_s9 + $0x18] sm:$0xff]  }
 0x7e2   : > { %3212 = vmatprep.subr.bf16.mxu1 %v4394_v46  ;;  %3054 = vmatprep.subr.bf16.mxu0 %v4168_v25 }
 0x884   : > { %v2744_v47 = vpop.f32.mrf.mxu0  ;;  %v2785_v48 = vpop.f32.mrf.mxu1 }
 0x885   : > { %v2745_v49 = vadd.f32 %v2744_v47, %v4831_v32  ;;  %v2786_v39 = vadd.f32 %v2785_v48, %v4845_v3  ;;  %v4195_v47 = vld [vmem:[%s5336_s9 + $0x10] sm:$0xff]   ;;  %v4196_v48 = vld [vmem:[%s5336_s9 + $0x8] sm:$0xff]  }
 0x886   : > { %v2746_v50 = vpop.f32.mrf.mxu0  ;;  %v3837_v51 = vpop.f32.mrf.mxu1 }
 0x887   : > { %v2792_v52 = vrot.slane %v2745_v49, 4  ;;  %v2747_v45 = vadd.f32 %v2746_v50, %v4834_v36  ;;  %v2812_v40 = vrot.slane %v2786_v39, 4  ;;  %v4197_v49 = vld [vmem:[%s5336_s9] sm:$0xff]  }
 0x888   : > { %v2748_v53 = vpop.f32.mrf.mxu0  ;;  %v2788_v54 = vpop.f32.mrf.mxu1  ;;  %v4198_v50 = vld [vmem:[%s5336_s9 + $0x60] ss:$0 sps:$4 sm:$0xff]  }
 0x889   : > { %v2794_v55 = vadd.f32 %v2792_v52, %v4820_v14  ;;  %v2802_v59 = vrot.slane %v2747_v45, 4  ;;  %v3210_v51 = vsel %vm3208_vm1, %v4198_v50, 0  ;;  %v4199_v52 = vld [vmem:[%s5336_s9 + $0x58] sm:$0xff]   ;;  %v4200_v45 = vld [vmem:[%s5336_s9 + $0x50] sm:$0xff]  }
 0x88a   : > { %v2749_v56 = vpop.f32.mrf.mxu0  ;;  %v3838_v57 = vpop.f32.mrf.mxu1 }
 0x88b   : > { %v3542_v58 = vmul.f32 -1.442695, %v2794_v55  ;;  %v2804_v60 = vadd.f32 %v2802_v59, %v4822_v16 }
 0x88d   : > { %4263 = vpow2.f32 %v3542_v58  ;;  %v3543_v61 = vmul.f32 -1.442695, %v2804_v60 }
 0x88f   : > { %4265 = vpow2.f32 %v3543_v61 }
 0x89a   : > { %v4264_v62 = vpop.eup %4263 }
 0x89b   : > { %v2798_v63 = vadd.f32 1.0, %v4264_v62 }
 0x89c   : > { %v4266_v0 = vpop.eup %4265 }
 0x89d   : > { %4267 = vrcp.f32 %v2798_v63  ;;  %v2808_v12 = vadd.f32 1.0, %v4266_v0 }
 0x89f   : > { %4269 = vrcp.f32 %v2808_v12 }
 0x8aa   : > { %v4268_v41 = vpop.eup %4267 }
 0x8ab   : > { %v2814_v42 = vmul.f32 %v4268_v41, %v2812_v40 }
 0x8ac   : > { %v4270_v9 = vpop.eup %4269 }
 0x8ad   : > { %v2815_v44 = vadd.f32 %v2814_v42, %v4825_v30  ;;  %v2817_v13 = vsub.f32 1.0, %v4270_v9  ;;  %v2822_v33 = vmul.f32 %v4270_v9, %v2820_v34 }
 0x8af   : > { %4271 = vtanh.f32 %v2815_v44 }
 0x8bc   : > { %v4272_v15 = vpop.eup %4271 }
 0x8bd   : > { %v2818_v20 = vmul.f32 %v4272_v15, %v2817_v13 }
 0x8bf   : > { %v5186_v31 = vadd.f32 %v2822_v33, %v2818_v20 }
 0x8c1   : > { %v2824_v18 = vpack.c.bf16 %v5186_v31, %v5186_v31  ;;  %v2938_v33 = vrot.slane %v5186_v31, 6  ;;  %v2959_v31 = vld [vmem:[%s5335_s8] sm:$0x3] }
 0x8c3   : > { %v2826_v19 = vrot.slane %v2824_v18, 2 }
 0x8c5   : > { %2861 = vmatmul.mubr.bf16.vlgmr.msra.gmra.mxu0 %v2826_v19  ;;  %3856 = vmatmul.mubr.bf16.vlgmr.msra.gmra.mxu1 %v2826_v19 }
 0x8c6   : > { %3086 = vmatprep.mubr.bf16.mxu0 %v4394_v46  ;;  %3055 = vmatpush1.bf16.msra.mxu0 %v4166_v38 }
 0x8c7   : > { %3056 = vmatprep.subr.bf16.mxu0 %v4171_v6  ;;  %3213 = vmatpush1.bf16.msra.mxu1 %v4190_v24 }
 0x8c8   : > { %3214 = vmatprep.subr.bf16.mxu1 %v4394_v46 }
 0x8ca   : > { %3057 = vmatpush1.bf16.msra.mxu0 %v4169_v22 }
 0x8cb   : > { %3058 = vmatprep.subr.bf16.mxu0 %v4174_v2  ;;  %3215 = vmatpush1.bf16.msra.mxu1 %v4191_v7  ;;  %v2964_v2 = vrot.slane %v2959_v31, %v4607_v23 }
 0x8cc   : > { %3216 = vmatprep.subr.bf16.mxu1 %v4394_v46 }
 0x8ce   : > { %3059 = vmatpush1.bf16.msra.mxu0 %v4172_v21  ;;  %v2968_v21 = vrot.slane %v2959_v31, %v4601_v11 }
 0x8cf   : > { %3060 = vmatprep.subr.bf16.mxu0 %v4177_v17  ;;  %3217 = vmatpush1.bf16.msra.mxu1 %v4192_v1 }
 0x8d0   : > { %3218 = vmatprep.subr.bf16.mxu1 %v4394_v46 }
 0x8d2   : > { %3061 = vmatpush1.bf16.msra.mxu0 %v4175_v4 }
 0x8d3   : > { %3062 = vmatprep.subr.bf16.mxu0 %v4180_v27  ;;  %3219 = vmatpush1.bf16.msra.mxu1 %v4193_v10 }
 0x8d4   : > { %3220 = vmatprep.subr.bf16.mxu1 %v4394_v46 }
 0x8d6   : > { %3063 = vmatpush1.bf16.msra.mxu0 %v4178_v28 }
 0x8d7   : > { %3064 = vmatprep.subr.bf16.mxu0 %v4183_v8  ;;  %3221 = vmatpush1.bf16.msra.mxu1 %v4194_v43 }
 0x8d8   : > { %3222 = vmatprep.subr.bf16.mxu1 %v4394_v46 }
 0x8da   : > { %3065 = vmatpush1.bf16.msra.mxu0 %v4181_v29 }
 0x8db   : > { %3066 = vmatprep.subr.bf16.mxu0 %v4186_v37  ;;  %3223 = vmatpush1.bf16.msra.mxu1 %v4195_v47 }
 0x8dc   : > { %3224 = vmatprep.subr.bf16.mxu1 %v4394_v46 }
 0x8de   : > { %3067 = vmatpush1.bf16.msra.mxu0 %v4184_v26  ;;  %v3562_v26 = vld [vmem:[%s5337_s10] ss:$0 sm:$0xff] }
 0x8df   : > { %3068 = vmatprep.subr.bf16.mxu0 %v4189_v35  ;;  %3225 = vmatpush1.bf16.msra.mxu1 %v4196_v48 }
 0x8e0   : > { %3226 = vmatprep.subr.bf16.mxu1 %v4394_v46 }
 0x8e2   : > { %3069 = vmatpush1.bf16.msra.mxu0 %v4187_v5 }
 0x8e3   : > { %3227 = vmatpush1.bf16.msra.mxu1 %v4197_v49 }
 0x8e4   : > { %3234 = vmatprep.subr.bf16.mxu1 %v4394_v46 }
 0x8e7   : > { %3235 = vmatpush2.bf16.msra.mxu1 %v3210_v51 }
 0x8e8   : > { %3236 = vmatprep.subr.bf16.mxu1 %v4394_v46 }
 0x8eb   : > { %3237 = vmatpush2.bf16.msra.mxu1 %v4199_v52 }
 0x8ec   : > { %3238 = vmatprep.subr.bf16.mxu1 %v4394_v46 }
 0x8ef   : > { %3239 = vmatpush2.bf16.msra.mxu1 %v4200_v45 }
 0x8f0   : > { %3240 = vmatprep.subr.bf16.mxu1 %v4394_v46 }
 0x985   : > { %v2862_v53 = vpop.f32.mrf.mxu0  ;;  %v2903_v54 = vpop.f32.mrf.mxu1 }
 0x986   : > { %v2863_v55 = vadd.f32 %v2862_v53, %v4831_v32  ;;  %v2904_v9 = vadd.f32 %v2903_v54, %v4845_v3  ;;  %v4201_v3 = vld [vmem:[%s5336_s9 + $0x48] sm:$0xff]  }
 0x987   : > { %v2864_v56 = vpop.f32.mrf.mxu0  ;;  %v3857_v57 = vpop.f32.mrf.mxu1  ;;  %3241 = vmatpush2.bf16.msra.mxu1 %v4201_v3 }
 0x988   : > { %v2910_v58 = vrot.slane %v2863_v55, 2  ;;  %v2865_v59 = vadd.f32 %v2864_v56, %v4834_v36  ;;  %v2930_v34 = vrot.slane %v2904_v9, 2  ;;  %3242 = vmatprep.subr.bf16.mxu1 %v4394_v46 }
 0x989   : > { %v2866_v60 = vpop.f32.mrf.mxu0  ;;  %v2906_v61 = vpop.f32.mrf.mxu1 }
 0x98a   : > { %v2912_v62 = vadd.f32 %v2910_v58, %v4820_v14  ;;  %v2920_v12 = vrot.slane %v2865_v59, 2 }
 0x98b   : > { %v2867_v63 = vpop.f32.mrf.mxu0  ;;  %v3858_v0 = vpop.f32.mrf.mxu1 }
 0x98c   : > { %v3544_v39 = vmul.f32 -1.442695, %v2912_v62  ;;  %v2922_v40 = vadd.f32 %v2920_v12, %v4822_v16 }
 0x98e   : > { %4273 = vpow2.f32 %v3544_v39  ;;  %v3545_v41 = vmul.f32 -1.442695, %v2922_v40 }
 0x990   : > { %4275 = vpow2.f32 %v3545_v41 }
 0x99b   : > { %v4274_v42 = vpop.eup %4273 }
 0x99c   : > { %v2916_v32 = vadd.f32 1.0, %v4274_v42 }
 0x99d   : > { %v4276_v44 = vpop.eup %4275 }
 0x99e   : > { %4277 = vrcp.f32 %v2916_v32  ;;  %v2926_v36 = vadd.f32 1.0, %v4276_v44 }
 0x9a0   : > { %4279 = vrcp.f32 %v2926_v36 }
 0x9ab   : > { %v4278_v13 = vpop.eup %4277 }
 0x9ac   : > { %v2932_v15 = vmul.f32 %v4278_v13, %v2930_v34 }
 0x9ad   : > { %v4280_v20 = vpop.eup %4279 }
 0x9ae   : > { %v2933_v14 = vadd.f32 %v2932_v15, %v4825_v30  ;;  %v2935_v16 = vsub.f32 1.0, %v4280_v20  ;;  %v2940_v25 = vmul.f32 %v4280_v20, %v2938_v33  ;;  %v4202_v30 = vld [vmem:[%s5336_s9 + $0x40] sm:$0xff]  }
 0x9af   : > { %3243 = vmatpush2.bf16.msra.mxu1 %v4202_v30 }
 0x9b0   : > { %4281 = vtanh.f32 %v2933_v14 }
 0x9bd   : > { %v4282_v18 = vpop.eup %4281 }
 0x9be   : > { %v2936_v19 = vmul.f32 %v4282_v18, %v2935_v16 }
 0x9c0   : > { %v2941_v38 = vadd.f32 %v2940_v25, %v2936_v19 }
 0x9c2   : > { %v2942_v6 = vpack.c.bf16 %v2941_v38, %v2941_v38 }
 0x9c4   : > { %v2972_v22 = vrot.slane %v2942_v6, 3 }
 0x9c6   : > { %3087 = vmatmul.mubr.bf16.vlgmr.msra.gmra.mxu0 %v2972_v22 }
 0xa86   : > { %v3088_v4 = vpop.f32.mrf.mxu0 }
 0xa87   : > { %v3089_v17 = vadd.f32 %v3088_v4, %v2964_v2 }
 0xa88   : > { %v3090_v27 = vpop.f32.mrf.mxu0 }
 0xa89   : > { %v3091_v28 = vadd.f32 %v3090_v27, %v2968_v21  ;;  %v3095_v29 = vpack.c.bf16 %v3089_v17, %v3089_v17 }
 0xa8a   : > { %v3092_v8 = vpop.f32.mrf.mxu0 }
 0xa8b   : > { %v3096_v46 = vpack.c.bf16 %v3091_v28, %v3091_v28 }
 0xa8c   : > { %v3093_v37 = vpop.f32.mrf.mxu0 }
 0xa8d   : > { %3576 = vmatprep.mubr.msk.bf16.mxu1 %vm3204_vm2, %v3096_v46 }
 0xa8e   : > { %3245 = vmatmul.mubr.bf16.vlgmr.msra.gmra.mxu1 %v3095_v29 }
 0xb4e   : > { %v3246_v35 = vpop.f32.mrf.mxu1 }
 0xb4f   : > { %v3247_v5 = vadd.f32 %v3562_v26, %v3246_v35 }
 0xb50   : > { %v3248_v23 = vpop.f32.mrf.mxu1 }
 0xb51   : > { %3252 = vst [vmem:[#allocation7] sm:$0x3] %v3247_v5 }
 0xb52   : > { %v3249_v11 = vpop.f32.mrf.mxu1 }
 0xb54   : > { %v3250_v24 = vpop.f32.mrf.mxu1 }
 0xb55 PF: > { %p3873_p8 = scmp.eq.s32.totalorder %s4473_s20, 3  ;;  %s4396_s22 = smov [#allocation7]  }
 0xb56   : > { %s3260_s23 = sshll.u32 %s4396_s22, 4  ;;  %s3261_s23 = int_to_ptr.vmem [resolvable:$true] %s3260_s23 }
 0xb57   : > { %s4333_s27 = scalar_lea.vmem %s3261_s23, 32  ;;  %p4340_p12 = scmp.lt.s32.totalorder %s3261_s23, %s3261_s23 }
 0xb58   : > { %p4334_p9 = scmp.ne.s32.totalorder %s3261_s23, %s4333_s27  ;;  %p4341_p13 = scmp.lt.s32.totalorder %s4333_s27, %s4333_s27 }
 0xb5a   : > { %p4335_p10 = pnand %p4334_p9, %p3873_p8  ;;  %p4342_p0 = por %p4341_p13, %p4340_p12 }
 0xb5c   : > { %p4336_p11 = pneg %p4335_p10 }
 0xb5e   : > { %p4343_p1 = pnand %p4342_p0, %p4336_p11 }
 0xb60   : > { %4346 = shalt.err (!%p4343_p1)
}
 0xb61   : > { %3864 = dma.vmem_to_hbm [thread:$0]  (%p3873_p8), %s3261_s23, 32, %s5338_s11, [#allocation6]  }
 0xb62   : > { %4374 = dma.done.wait (%p3873_p8), [#allocation6], 32  }
 0xb63   : > { %4376 = vsyncadd (%p3873_p8), [#allocation6], 4294967264 }
 0xb64 PF: > { %s5343_s28 = sld [smem:[#allocation10_spill]]  ;;  %p20_p2 = scmp.ge.s32.totalorder %s4476_s21, 6  }
 0xb65   : > { %s5344_s17 = smov %s4383_s18  ;;  %s5346_s19 = smov %s4476_s21 }
 0xb66   :  { %22 = sbr.rel (!%p20_p2) target bundleno = 3 (0x3), region = 150 }
 0xb6a   : > { %s5345_s18 = smov %s5343_s28 }
 0xb6b   :  { %3273 = vsyncpa [#allocation5], 1 }
 0xb6c   :  { %3275 = vsyncpa [#allocation5 + $0x1], 1 }
 0xb6d   :  { %3276 = vsyncpa [#allocation6], 1 }
 0xb6e   :  { %3278 = vsyncpa [#allocation6 + $0x1], 1 }

</bundles_post_ra>
